<compile_context>
chip_gen: v5e
topology: v5e:2x2
jax: 0.10.0
libtpu: 0.0.40
codegen_flags: <defaults>
</compile_context>

<pallas_src>
import functools

import jax
import jax.numpy as jnp
from jax import lax
from jax.experimental import pallas as pl
from jax.experimental.pallas import tpu as pltpu


def _sigmoid(z):
    # Exact logistic: exp() goes to the EUP; keep the exact divide so the
    # correctness check against the f32 reference stays tight.
    # (pl.reciprocal(1 + exp(-z), approx=True) is a free-slot option when a
    #  looser tolerance is acceptable.)
    return 1.0 / (1.0 + jnp.exp(-z))


def _cbam_kernel(x_ref, w1_ref, w2_ref, cw_ref, cb_ref, o_ref, *, H, W, ksize):
    """One batch element per grid step, lane-dense (C, H*W) layout.

    x_ref : (1, C, H*W) VMEM  input block (row-major flattened spatial dims)
    w1_ref: (Cr, C)     VMEM  Conv2d(C, C//r, 1, bias=False) weight
    w2_ref: (C, Cr)     VMEM  Conv2d(C//r, C, 1, bias=False) weight
    cw_ref: (2, k*k)    VMEM  7x7 conv weight, rows = [max-map, mean-map]
    cb_ref: (1,)        SMEM  7x7 conv bias
    o_ref : (1, C, H*W) VMEM  output block
    """
    C = x_ref.shape[1]
    HW = H * W
    pad = ksize // 2

    x2 = x_ref[0]                                              # (C, HW) f32

    # ---------------- channel attention: pools + shared MLP on the MXU ------
    maxc = jnp.max(x2, axis=1, keepdims=True)                  # (C, 1) lane reduce
    avgc = jnp.sum(x2, axis=1, keepdims=True) * (1.0 / HW)     # (C, 1)
    pooled = jnp.concatenate([maxc, avgc], axis=1)             # (C, 2)

    hidden = jnp.maximum(
        jnp.dot(w1_ref[...], pooled,
                preferred_element_type=jnp.float32,
                precision=lax.Precision.HIGHEST), 0.0)         # (Cr, 2)
    z = jnp.dot(w2_ref[...], hidden,
                preferred_element_type=jnp.float32,
                precision=lax.Precision.HIGHEST)               # (C, 2)
    ca = _sigmoid(z[:, 0:1] + z[:, 1:2])                       # (C, 1)

    y = x2 * ca                                                # channel-scaled (C, HW)

    # ---------------- spatial attention: 7x7 conv via lane rolls + masks ----
    cmax = jnp.max(y, axis=0, keepdims=True)                   # (1, HW) over channels
    cavg = jnp.sum(y, axis=0, keepdims=True) * (1.0 / C)       # (1, HW)
    stacked = jnp.concatenate([cmax, cavg], axis=0)            # (2, HW)

    idx = lax.broadcasted_iota(jnp.int32, (1, HW), 1)          # flat spatial index
    if (W & (W - 1)) == 0:
        w_idx = idx & (W - 1)                                  # column index (pow-2 W)
    else:
        w_idx = idx % W  # TODO(synk): non-pow-2 W relies on vector int remainder

    # Row-validity masks: 0 <= h+dh < H is a contiguous flat-index range.
    hvalid = []
    for kh in range(ksize):
        dh = kh - pad
        lo = max(0, -dh) * W
        hi = min(H, H - dh) * W
        hvalid.append((idx >= lo) & (idx < hi))
    # Column-validity masks: 0 <= w+dw < W.
    wvalid = []
    for kw in range(ksize):
        dw = kw - pad
        wvalid.append((w_idx >= max(0, -dw)) & (w_idx < min(W, W - dw)))

    wmat = cw_ref[...]                                         # (2, k*k) tap weights
    acc2 = jnp.zeros((2, HW), jnp.float32)
    for kh in range(ksize):
        dh = kh - pad
        for kw in range(ksize):
            dw = kw - pad
            s = dh * W + dw                                    # flat shift for this tap
            shifted = stacked if s == 0 else pltpu.roll(
                stacked, shift=(-s) % HW, axis=1)              # XLU lane rotate
            t = kh * ksize + kw
            wcol = wmat[:, t:t + 1]                            # (2, 1) per-map weight
            acc2 = acc2 + jnp.where(hvalid[kh] & wvalid[kw], shifted * wcol, 0.0)

    acc = jnp.sum(acc2, axis=0, keepdims=True) + cb_ref[0]     # (1, HW)
    sa = _sigmoid(acc)

    # ---------------- spatial scale + residual, one lane-dense full store ---
    o_ref[0] = (y * sa + x2).astype(o_ref.dtype)


def cbam_attention_block(x, w1, w2, conv_w, conv_b):
    """x: (B,C,H,W) f32; w1: (C//r, C); w2: (C, C//r); conv_w: (1,2,k,k); conv_b: (1,)."""
    B, C, H, W = x.shape
    cr = w1.shape[0]
    ksize = conv_w.shape[-1]
    HW = H * W

    x_flat = x.reshape(B, C, HW)              # lane-dense spatial layout
    cw = conv_w.reshape(2, ksize * ksize)     # rows: [max-map, mean-map] (OIHW order)

    kernel = functools.partial(_cbam_kernel, H=H, W=W, ksize=ksize)
    out_flat = pl.pallas_call(
        kernel,
        out_shape=jax.ShapeDtypeStruct((B, C, HW), x.dtype),
        grid=(B,),
        in_specs=[
            pl.BlockSpec((1, C, HW), lambda b: (b, 0, 0)),
            pl.BlockSpec((cr, C), lambda b: (0, 0)),
            pl.BlockSpec((C, cr), lambda b: (0, 0)),
            pl.BlockSpec((2, ksize * ksize), lambda b: (0, 0)),
            pl.BlockSpec(memory_space=pltpu.MemorySpace.SMEM),
        ],
        out_specs=pl.BlockSpec((1, C, HW), lambda b: (b, 0, 0)),
        compiler_params=pltpu.CompilerParams(
            dimension_semantics=("parallel",),
            vmem_limit_bytes=32 * 1024 * 1024,
        ),
        # TODO(synk): for production C/H/W on v7x (64 MiB VMEM), tile the grid
        # over H with a ksize//2 halo instead of one full (C, H*W) block.
    )(x_flat, w1, w2, cw, conv_b)
    return out_flat.reshape(B, C, H, W)


def cbam_reference(x, w1, w2, conv_w, conv_b):
    """Pure-JAX reference matching the PyTorch module semantics."""
    maxp = jnp.max(x, axis=(2, 3))   # (B, C)  AdaptiveMaxPool2d(1)
    avgp = jnp.mean(x, axis=(2, 3))  # (B, C)  AdaptiveAvgPool2d(1)

    def squeeze(v):
        h = jnp.maximum(jnp.einsum('bc,rc->br', v, w1, precision=lax.Precision.HIGHEST), 0.0)
        return jnp.einsum('br,cr->bc', h, w2, precision=lax.Precision.HIGHEST)

    ca = jax.nn.sigmoid(squeeze(maxp) + squeeze(avgp))[:, :, None, None]  # (B, C, 1, 1)
    out = x * ca

    cmax = jnp.max(out, axis=1, keepdims=True)
    cavg = jnp.mean(out, axis=1, keepdims=True)
    stacked = jnp.concatenate([cmax, cavg], axis=1)  # (B, 2, H, W)
    pad = conv_w.shape[-1] // 2
    conv = lax.conv_general_dilated(
        stacked, conv_w, window_strides=(1, 1),
        padding=((pad, pad), (pad, pad)),
        dimension_numbers=('NCHW', 'OIHW', 'NCHW'),
        precision=lax.Precision.HIGHEST)
    sa = jax.nn.sigmoid(conv + conv_b[None, :, None, None])  # (B, 1, H, W)
    return out * sa + x


if __name__ == "__main__":
    B, C, H, W = 2, 16, 16, 16
    reduction = 4
    ksize = 7
    cr = C // reduction

    key = jax.random.PRNGKey(0)
    kx, k1, k2, k3, k4 = jax.random.split(key, 5)
    x = jax.random.normal(kx, (B, C, H, W), dtype=jnp.float32)
    # Deterministic synthetic parameters (shapes from the module __init__):
    w1 = jax.random.normal(k1, (cr, C), dtype=jnp.float32) * 0.5            # Conv2d(C, C//r, 1, bias=False)
    w2 = jax.random.normal(k2, (C, cr), dtype=jnp.float32) * 0.5            # Conv2d(C//r, C, 1, bias=False)
    conv_w = jax.random.normal(k3, (1, 2, ksize, ksize), dtype=jnp.float32) * 0.2  # Conv2d(2, 1, 7, padding=3)
    conv_b = jax.random.normal(k4, (1,), dtype=jnp.float32) * 0.1

    out = cbam_attention_block(x, w1, w2, conv_w, conv_b)
    out = jax.block_until_ready(out)

    ref = cbam_reference(x, w1, w2, conv_w, conv_b)
    assert out.shape == x.shape and out.dtype == x.dtype
    err = float(jnp.max(jnp.abs(out - ref)))
    assert err < 2e-3, f"max abs err too large: {err}"
    print("KERNEL_OK")
</pallas_src>

<mosaic_0001>
module attributes {stable_mosaic.version = 11 : i64} {
  func.func @_cbam_kernel(%arg0: i32, %arg1: memref<1x16x256xf32, #tpu.memory_space<vmem>>, %arg2: memref<4x16xf32, #tpu.memory_space<vmem>>, %arg3: memref<16x4xf32, #tpu.memory_space<vmem>>, %arg4: memref<2x49xf32, #tpu.memory_space<vmem>>, %arg5: memref<1xf32, #tpu.memory_space<smem>>, %arg6: memref<1x16x256xf32, #tpu.memory_space<vmem>>) attributes {dimension_semantics = [#tpu.dimension_semantics<parallel>], iteration_bounds = array<i64: 2>, scalar_prefetch = 0 : i64, scratch_operands = 0 : i64, tpu.core_type = #tpu.core_type<tc>, window_params = [{transform_indices = @transform_0, window_bounds = array<i64: 1, 16, 256>}, {pipeline_mode = #tpu.pipeline_mode<synchronous>, transform_indices = @transform_1, window_bounds = array<i64: 4, 16>}, {pipeline_mode = #tpu.pipeline_mode<synchronous>, transform_indices = @transform_2, window_bounds = array<i64: 16, 4>}, {pipeline_mode = #tpu.pipeline_mode<synchronous>, transform_indices = @transform_3, window_bounds = array<i64: 2, 49>}, {transform_indices = @transform_4, window_bounds = array<i64: 1>}, {transform_indices = @transform_5, window_bounds = array<i64: 1, 16, 256>}]} {
    %c0 = arith.constant 0 : index
    %c0_0 = arith.constant 0 : index
    %c0_1 = arith.constant 0 : index
    %0 = vector.load %arg1[%c0, %c0_0, %c0_1] : memref<1x16x256xf32, #tpu.memory_space<vmem>>, vector<1x16x256xf32>
    %1 = vector.shape_cast %0 : vector<1x16x256xf32> to vector<16x256xf32>
    %cst = arith.constant dense<0xFF800000> : vector<16xf32>
    %2 = vector.multi_reduction <maximumf>, %1, %cst [1] : vector<16x256xf32> to vector<16xf32>
    %3 = vector.shape_cast %2 : vector<16xf32> to vector<16x1xf32>
    %cst_2 = arith.constant dense<0.000000e+00> : vector<16xf32>
    %4 = vector.multi_reduction <add>, %1, %cst_2 [1] : vector<16x256xf32> to vector<16xf32>
    %5 = vector.shape_cast %4 : vector<16xf32> to vector<16x1xf32>
    %cst_3 = arith.constant 3.906250e-03 : f32
    %6 = vector.broadcast %cst_3 : f32 to vector<16x1xf32>
    %7 = arith.mulf %5, %6 : vector<16x1xf32>
    %8 = tpu.concatenate %3, %7 in 1 : vector<16x1xf32>, vector<16x1xf32> -> vector<16x2xf32>
    %c0_4 = arith.constant 0 : index
    %c0_5 = arith.constant 0 : index
    %9 = vector.load %arg2[%c0_4, %c0_5] : memref<4x16xf32, #tpu.memory_space<vmem>>, vector<4x16xf32>
    %cst_6 = arith.constant dense<0.000000e+00> : vector<4x2xf32>
    %10 = tpu.matmul %9, %8, %cst_6 {dimension_numbers = #tpu.dot_dimension_numbers<[1], [0], [0], [1], [0, 0, 1, 1], [], []>, precision = #tpu.contract_precision<fp32>} : vector<4x16xf32>, vector<16x2xf32>, vector<4x2xf32> -> vector<4x2xf32>
    %cst_7 = arith.constant 0.000000e+00 : f32
    %11 = vector.broadcast %cst_7 : f32 to vector<4x2xf32>
    %12 = arith.maximumf %10, %11 : vector<4x2xf32>
    %c0_8 = arith.constant 0 : index
    %c0_9 = arith.constant 0 : index
    %13 = vector.load %arg3[%c0_8, %c0_9] : memref<16x4xf32, #tpu.memory_space<vmem>>, vector<16x4xf32>
    %cst_10 = arith.constant dense<0.000000e+00> : vector<16x2xf32>
    %14 = tpu.matmul %13, %12, %cst_10 {dimension_numbers = #tpu.dot_dimension_numbers<[1], [0], [0], [1], [0, 0, 1, 1], [], []>, precision = #tpu.contract_precision<fp32>} : vector<16x4xf32>, vector<4x2xf32>, vector<16x2xf32> -> vector<16x2xf32>
    %15 = vector.extract_strided_slice %14 {offsets = [0, 0], sizes = [16, 1], strides = [1, 1]} : vector<16x2xf32> to vector<16x1xf32>
    %16 = vector.extract_strided_slice %14 {offsets = [0, 1], sizes = [16, 1], strides = [1, 1]} : vector<16x2xf32> to vector<16x1xf32>
    %17 = arith.addf %15, %16 : vector<16x1xf32>
    %cst_11 = arith.constant 0.000000e+00 : f32
    %18 = vector.broadcast %cst_11 : f32 to vector<16x1xf32>
    %19 = arith.subf %18, %17 : vector<16x1xf32>
    %20 = math.exp %19 : vector<16x1xf32>
    %cst_12 = arith.constant 1.000000e+00 : f32
    %21 = vector.broadcast %cst_12 : f32 to vector<16x1xf32>
    %22 = arith.addf %21, %20 : vector<16x1xf32>
    %cst_13 = arith.constant 1.000000e+00 : f32
    %23 = vector.broadcast %cst_13 : f32 to vector<16x1xf32>
    %24 = arith.divf %23, %22 : vector<16x1xf32>
    %25 = vector.broadcast %24 : vector<16x1xf32> to vector<16x256xf32>
    %26 = arith.mulf %1, %25 : vector<16x256xf32>
    %cst_14 = arith.constant dense<0xFF800000> : vector<256xf32>
    %27 = vector.multi_reduction <maximumf>, %26, %cst_14 [0] : vector<16x256xf32> to vector<256xf32>
    %28 = vector.shape_cast %27 : vector<256xf32> to vector<1x256xf32>
    %cst_15 = arith.constant dense<0.000000e+00> : vector<256xf32>
    %29 = vector.multi_reduction <add>, %26, %cst_15 [0] : vector<16x256xf32> to vector<256xf32>
    %30 = vector.shape_cast %29 : vector<256xf32> to vector<1x256xf32>
    %cst_16 = arith.constant 6.250000e-02 : f32
    %31 = vector.broadcast %cst_16 : f32 to vector<1x256xf32>
    %32 = arith.mulf %30, %31 : vector<1x256xf32>
    %33 = tpu.concatenate %28, %32 in 0 : vector<1x256xf32>, vector<1x256xf32> -> vector<2x256xf32>
    %34 = tpu.iota {dimensions = array<i32: 1>} : vector<1x256xi32>
    %c15_i32 = arith.constant 15 : i32
    %35 = vector.broadcast %c15_i32 : i32 to vector<1x256xi32>
    %36 = arith.andi %34, %35 : vector<1x256xi32>
    %c48_i32 = arith.constant 48 : i32
    %37 = vector.broadcast %c48_i32 : i32 to vector<1x256xi32>
    %38 = arith.cmpi sge, %34, %37 : vector<1x256xi32>
    %c256_i32 = arith.constant 256 : i32
    %39 = vector.broadcast %c256_i32 : i32 to vector<1x256xi32>
    %40 = arith.cmpi slt, %34, %39 : vector<1x256xi32>
    %41 = arith.andi %38, %40 : vector<1x256xi1>
    %c32_i32 = arith.constant 32 : i32
    %42 = vector.broadcast %c32_i32 : i32 to vector<1x256xi32>
    %43 = arith.cmpi sge, %34, %42 : vector<1x256xi32>
    %c256_i32_17 = arith.constant 256 : i32
    %44 = vector.broadcast %c256_i32_17 : i32 to vector<1x256xi32>
    %45 = arith.cmpi slt, %34, %44 : vector<1x256xi32>
    %46 = arith.andi %43, %45 : vector<1x256xi1>
    %c16_i32 = arith.constant 16 : i32
    %47 = vector.broadcast %c16_i32 : i32 to vector<1x256xi32>
    %48 = arith.cmpi sge, %34, %47 : vector<1x256xi32>
    %c256_i32_18 = arith.constant 256 : i32
    %49 = vector.broadcast %c256_i32_18 : i32 to vector<1x256xi32>
    %50 = arith.cmpi slt, %34, %49 : vector<1x256xi32>
    %51 = arith.andi %48, %50 : vector<1x256xi1>
    %c0_i32 = arith.constant 0 : i32
    %52 = vector.broadcast %c0_i32 : i32 to vector<1x256xi32>
    %53 = arith.cmpi sge, %34, %52 : vector<1x256xi32>
    %c256_i32_19 = arith.constant 256 : i32
    %54 = vector.broadcast %c256_i32_19 : i32 to vector<1x256xi32>
    %55 = arith.cmpi slt, %34, %54 : vector<1x256xi32>
    %56 = arith.andi %53, %55 : vector<1x256xi1>
    %c0_i32_20 = arith.constant 0 : i32
    %57 = vector.broadcast %c0_i32_20 : i32 to vector<1x256xi32>
    %58 = arith.cmpi sge, %34, %57 : vector<1x256xi32>
    %c240_i32 = arith.constant 240 : i32
    %59 = vector.broadcast %c240_i32 : i32 to vector<1x256xi32>
    %60 = arith.cmpi slt, %34, %59 : vector<1x256xi32>
    %61 = arith.andi %58, %60 : vector<1x256xi1>
    %c0_i32_21 = arith.constant 0 : i32
    %62 = vector.broadcast %c0_i32_21 : i32 to vector<1x256xi32>
    %63 = arith.cmpi sge, %34, %62 : vector<1x256xi32>
    %c224_i32 = arith.constant 224 : i32
    %64 = vector.broadcast %c224_i32 : i32 to vector<1x256xi32>
    %65 = arith.cmpi slt, %34, %64 : vector<1x256xi32>
    %66 = arith.andi %63, %65 : vector<1x256xi1>
    %c0_i32_22 = arith.constant 0 : i32
    %67 = vector.broadcast %c0_i32_22 : i32 to vector<1x256xi32>
    %68 = arith.cmpi sge, %34, %67 : vector<1x256xi32>
    %c208_i32 = arith.constant 208 : i32
    %69 = vector.broadcast %c208_i32 : i32 to vector<1x256xi32>
    %70 = arith.cmpi slt, %34, %69 : vector<1x256xi32>
    %71 = arith.andi %68, %70 : vector<1x256xi1>
    %c3_i32 = arith.constant 3 : i32
    %72 = vector.broadcast %c3_i32 : i32 to vector<1x256xi32>
    %73 = arith.cmpi sge, %36, %72 : vector<1x256xi32>
    %c16_i32_23 = arith.constant 16 : i32
    %74 = vector.broadcast %c16_i32_23 : i32 to vector<1x256xi32>
    %75 = arith.cmpi slt, %36, %74 : vector<1x256xi32>
    %76 = arith.andi %73, %75 : vector<1x256xi1>
    %c2_i32 = arith.constant 2 : i32
    %77 = vector.broadcast %c2_i32 : i32 to vector<1x256xi32>
    %78 = arith.cmpi sge, %36, %77 : vector<1x256xi32>
    %c16_i32_24 = arith.constant 16 : i32
    %79 = vector.broadcast %c16_i32_24 : i32 to vector<1x256xi32>
    %80 = arith.cmpi slt, %36, %79 : vector<1x256xi32>
    %81 = arith.andi %78, %80 : vector<1x256xi1>
    %c1_i32 = arith.constant 1 : i32
    %82 = vector.broadcast %c1_i32 : i32 to vector<1x256xi32>
    %83 = arith.cmpi sge, %36, %82 : vector<1x256xi32>
    %c16_i32_25 = arith.constant 16 : i32
    %84 = vector.broadcast %c16_i32_25 : i32 to vector<1x256xi32>
    %85 = arith.cmpi slt, %36, %84 : vector<1x256xi32>
    %86 = arith.andi %83, %85 : vector<1x256xi1>
    %c0_i32_26 = arith.constant 0 : i32
    %87 = vector.broadcast %c0_i32_26 : i32 to vector<1x256xi32>
    %88 = arith.cmpi sge, %36, %87 : vector<1x256xi32>
    %c16_i32_27 = arith.constant 16 : i32
    %89 = vector.broadcast %c16_i32_27 : i32 to vector<1x256xi32>
    %90 = arith.cmpi slt, %36, %89 : vector<1x256xi32>
    %91 = arith.andi %88, %90 : vector<1x256xi1>
    %c0_i32_28 = arith.constant 0 : i32
    %92 = vector.broadcast %c0_i32_28 : i32 to vector<1x256xi32>
    %93 = arith.cmpi sge, %36, %92 : vector<1x256xi32>
    %c15_i32_29 = arith.constant 15 : i32
    %94 = vector.broadcast %c15_i32_29 : i32 to vector<1x256xi32>
    %95 = arith.cmpi slt, %36, %94 : vector<1x256xi32>
    %96 = arith.andi %93, %95 : vector<1x256xi1>
    %c0_i32_30 = arith.constant 0 : i32
    %97 = vector.broadcast %c0_i32_30 : i32 to vector<1x256xi32>
    %98 = arith.cmpi sge, %36, %97 : vector<1x256xi32>
    %c14_i32 = arith.constant 14 : i32
    %99 = vector.broadcast %c14_i32 : i32 to vector<1x256xi32>
    %100 = arith.cmpi slt, %36, %99 : vector<1x256xi32>
    %101 = arith.andi %98, %100 : vector<1x256xi1>
    %c0_i32_31 = arith.constant 0 : i32
    %102 = vector.broadcast %c0_i32_31 : i32 to vector<1x256xi32>
    %103 = arith.cmpi sge, %36, %102 : vector<1x256xi32>
    %c13_i32 = arith.constant 13 : i32
    %104 = vector.broadcast %c13_i32 : i32 to vector<1x256xi32>
    %105 = arith.cmpi slt, %36, %104 : vector<1x256xi32>
    %106 = arith.andi %103, %105 : vector<1x256xi1>
    %c0_32 = arith.constant 0 : index
    %c0_33 = arith.constant 0 : index
    %107 = vector.load %arg4[%c0_32, %c0_33] : memref<2x49xf32, #tpu.memory_space<vmem>>, vector<2x49xf32>
    %cst_34 = arith.constant 0.000000e+00 : f32
    %108 = vector.broadcast %cst_34 : f32 to vector<2x256xf32>
    %c51_i32 = arith.constant 51 : i32
    %109 = tpu.dynamic_rotate %33 by %c51_i32 dim 1 : vector<2x256xf32>, i32 -> vector<2x256xf32>
    %110 = vector.extract_strided_slice %107 {offsets = [0, 0], sizes = [2, 1], strides = [1, 1]} : vector<2x49xf32> to vector<2x1xf32>
    %111 = arith.andi %41, %76 : vector<1x256xi1>
    %112 = vector.broadcast %110 : vector<2x1xf32> to vector<2x256xf32>
    %113 = arith.mulf %109, %112 : vector<2x256xf32>
    %cst_35 = arith.constant 0.000000e+00 : f32
    %114 = vector.shape_cast %111 : vector<1x256xi1> to vector<1x256xi1>
    %115 = vector.broadcast %114 : vector<1x256xi1> to vector<2x256xi1>
    %116 = vector.broadcast %cst_35 : f32 to vector<2x256xf32>
    %117 = arith.select %115, %113, %116 : vector<2x256xi1>, vector<2x256xf32>
    %118 = arith.addf %108, %117 : vector<2x256xf32>
    %c50_i32 = arith.constant 50 : i32
    %119 = tpu.dynamic_rotate %33 by %c50_i32 dim 1 : vector<2x256xf32>, i32 -> vector<2x256xf32>
    %120 = vector.extract_strided_slice %107 {offsets = [0, 1], sizes = [2, 1], strides = [1, 1]} : vector<2x49xf32> to vector<2x1xf32>
    %121 = arith.andi %41, %81 : vector<1x256xi1>
    %122 = vector.broadcast %120 : vector<2x1xf32> to vector<2x256xf32>
    %123 = arith.mulf %119, %122 : vector<2x256xf32>
    %cst_36 = arith.constant 0.000000e+00 : f32
    %124 = vector.shape_cast %121 : vector<1x256xi1> to vector<1x256xi1>
    %125 = vector.broadcast %124 : vector<1x256xi1> to vector<2x256xi1>
    %126 = vector.broadcast %cst_36 : f32 to vector<2x256xf32>
    %127 = arith.select %125, %123, %126 : vector<2x256xi1>, vector<2x256xf32>
    %128 = arith.addf %118, %127 : vector<2x256xf32>
    %c49_i32 = arith.constant 49 : i32
    %129 = tpu.dynamic_rotate %33 by %c49_i32 dim 1 : vector<2x256xf32>, i32 -> vector<2x256xf32>
    %130 = vector.extract_strided_slice %107 {offsets = [0, 2], sizes = [2, 1], strides = [1, 1]} : vector<2x49xf32> to vector<2x1xf32>
    %131 = arith.andi %41, %86 : vector<1x256xi1>
    %132 = vector.broadcast %130 : vector<2x1xf32> to vector<2x256xf32>
    %133 = arith.mulf %129, %132 : vector<2x256xf32>
    %cst_37 = arith.constant 0.000000e+00 : f32
    %134 = vector.shape_cast %131 : vector<1x256xi1> to vector<1x256xi1>
    %135 = vector.broadcast %134 : vector<1x256xi1> to vector<2x256xi1>
    %136 = vector.broadcast %cst_37 : f32 to vector<2x256xf32>
    %137 = arith.select %135, %133, %136 : vector<2x256xi1>, vector<2x256xf32>
    %138 = arith.addf %128, %137 : vector<2x256xf32>
    %c48_i32_38 = arith.constant 48 : i32
    %139 = tpu.dynamic_rotate %33 by %c48_i32_38 dim 1 : vector<2x256xf32>, i32 -> vector<2x256xf32>
    %140 = vector.extract_strided_slice %107 {offsets = [0, 3], sizes = [2, 1], strides = [1, 1]} : vector<2x49xf32> to vector<2x1xf32>
    %141 = arith.andi %41, %91 : vector<1x256xi1>
    %142 = vector.broadcast %140 : vector<2x1xf32> to vector<2x256xf32>
    %143 = arith.mulf %139, %142 : vector<2x256xf32>
    %cst_39 = arith.constant 0.000000e+00 : f32
    %144 = vector.shape_cast %141 : vector<1x256xi1> to vector<1x256xi1>
    %145 = vector.broadcast %144 : vector<1x256xi1> to vector<2x256xi1>
    %146 = vector.broadcast %cst_39 : f32 to vector<2x256xf32>
    %147 = arith.select %145, %143, %146 : vector<2x256xi1>, vector<2x256xf32>
    %148 = arith.addf %138, %147 : vector<2x256xf32>
    %c47_i32 = arith.constant 47 : i32
    %149 = tpu.dynamic_rotate %33 by %c47_i32 dim 1 : vector<2x256xf32>, i32 -> vector<2x256xf32>
    %150 = vector.extract_strided_slice %107 {offsets = [0, 4], sizes = [2, 1], strides = [1, 1]} : vector<2x49xf32> to vector<2x1xf32>
    %151 = arith.andi %41, %96 : vector<1x256xi1>
    %152 = vector.broadcast %150 : vector<2x1xf32> to vector<2x256xf32>
    %153 = arith.mulf %149, %152 : vector<2x256xf32>
    %cst_40 = arith.constant 0.000000e+00 : f32
    %154 = vector.shape_cast %151 : vector<1x256xi1> to vector<1x256xi1>
    %155 = vector.broadcast %154 : vector<1x256xi1> to vector<2x256xi1>
    %156 = vector.broadcast %cst_40 : f32 to vector<2x256xf32>
    %157 = arith.select %155, %153, %156 : vector<2x256xi1>, vector<2x256xf32>
    %158 = arith.addf %148, %157 : vector<2x256xf32>
    %c46_i32 = arith.constant 46 : i32
    %159 = tpu.dynamic_rotate %33 by %c46_i32 dim 1 : vector<2x256xf32>, i32 -> vector<2x256xf32>
    %160 = vector.extract_strided_slice %107 {offsets = [0, 5], sizes = [2, 1], strides = [1, 1]} : vector<2x49xf32> to vector<2x1xf32>
    %161 = arith.andi %41, %101 : vector<1x256xi1>
    %162 = vector.broadcast %160 : vector<2x1xf32> to vector<2x256xf32>
    %163 = arith.mulf %159, %162 : vector<2x256xf32>
    %cst_41 = arith.constant 0.000000e+00 : f32
    %164 = vector.shape_cast %161 : vector<1x256xi1> to vector<1x256xi1>
    %165 = vector.broadcast %164 : vector<1x256xi1> to vector<2x256xi1>
    %166 = vector.broadcast %cst_41 : f32 to vector<2x256xf32>
    %167 = arith.select %165, %163, %166 : vector<2x256xi1>, vector<2x256xf32>
    %168 = arith.addf %158, %167 : vector<2x256xf32>
    %c45_i32 = arith.constant 45 : i32
    %169 = tpu.dynamic_rotate %33 by %c45_i32 dim 1 : vector<2x256xf32>, i32 -> vector<2x256xf32>
    %170 = vector.extract_strided_slice %107 {offsets = [0, 6], sizes = [2, 1], strides = [1, 1]} : vector<2x49xf32> to vector<2x1xf32>
    %171 = arith.andi %41, %106 : vector<1x256xi1>
    %172 = vector.broadcast %170 : vector<2x1xf32> to vector<2x256xf32>
    %173 = arith.mulf %169, %172 : vector<2x256xf32>
    %cst_42 = arith.constant 0.000000e+00 : f32
    %174 = vector.shape_cast %171 : vector<1x256xi1> to vector<1x256xi1>
    %175 = vector.broadcast %174 : vector<1x256xi1> to vector<2x256xi1>
    %176 = vector.broadcast %cst_42 : f32 to vector<2x256xf32>
    %177 = arith.select %175, %173, %176 : vector<2x256xi1>, vector<2x256xf32>
    %178 = arith.addf %168, %177 : vector<2x256xf32>
    %c35_i32 = arith.constant 35 : i32
    %179 = tpu.dynamic_rotate %33 by %c35_i32 dim 1 : vector<2x256xf32>, i32 -> vector<2x256xf32>
    %180 = vector.extract_strided_slice %107 {offsets = [0, 7], sizes = [2, 1], strides = [1, 1]} : vector<2x49xf32> to vector<2x1xf32>
    %181 = arith.andi %46, %76 : vector<1x256xi1>
    %182 = vector.broadcast %180 : vector<2x1xf32> to vector<2x256xf32>
    %183 = arith.mulf %179, %182 : vector<2x256xf32>
    %cst_43 = arith.constant 0.000000e+00 : f32
    %184 = vector.shape_cast %181 : vector<1x256xi1> to vector<1x256xi1>
    %185 = vector.broadcast %184 : vector<1x256xi1> to vector<2x256xi1>
    %186 = vector.broadcast %cst_43 : f32 to vector<2x256xf32>
    %187 = arith.select %185, %183, %186 : vector<2x256xi1>, vector<2x256xf32>
    %188 = arith.addf %178, %187 : vector<2x256xf32>
    %c34_i32 = arith.constant 34 : i32
    %189 = tpu.dynamic_rotate %33 by %c34_i32 dim 1 : vector<2x256xf32>, i32 -> vector<2x256xf32>
    %190 = vector.extract_strided_slice %107 {offsets = [0, 8], sizes = [2, 1], strides = [1, 1]} : vector<2x49xf32> to vector<2x1xf32>
    %191 = arith.andi %46, %81 : vector<1x256xi1>
    %192 = vector.broadcast %190 : vector<2x1xf32> to vector<2x256xf32>
    %193 = arith.mulf %189, %192 : vector<2x256xf32>
    %cst_44 = arith.constant 0.000000e+00 : f32
    %194 = vector.shape_cast %191 : vector<1x256xi1> to vector<1x256xi1>
    %195 = vector.broadcast %194 : vector<1x256xi1> to vector<2x256xi1>
    %196 = vector.broadcast %cst_44 : f32 to vector<2x256xf32>
    %197 = arith.select %195, %193, %196 : vector<2x256xi1>, vector<2x256xf32>
    %198 = arith.addf %188, %197 : vector<2x256xf32>
    %c33_i32 = arith.constant 33 : i32
    %199 = tpu.dynamic_rotate %33 by %c33_i32 dim 1 : vector<2x256xf32>, i32 -> vector<2x256xf32>
    %200 = vector.extract_strided_slice %107 {offsets = [0, 9], sizes = [2, 1], strides = [1, 1]} : vector<2x49xf32> to vector<2x1xf32>
    %201 = arith.andi %46, %86 : vector<1x256xi1>
    %202 = vector.broadcast %200 : vector<2x1xf32> to vector<2x256xf32>
    %203 = arith.mulf %199, %202 : vector<2x256xf32>
    %cst_45 = arith.constant 0.000000e+00 : f32
    %204 = vector.shape_cast %201 : vector<1x256xi1> to vector<1x256xi1>
    %205 = vector.broadcast %204 : vector<1x256xi1> to vector<2x256xi1>
    %206 = vector.broadcast %cst_45 : f32 to vector<2x256xf32>
    %207 = arith.select %205, %203, %206 : vector<2x256xi1>, vector<2x256xf32>
    %208 = arith.addf %198, %207 : vector<2x256xf32>
    %c32_i32_46 = arith.constant 32 : i32
    %209 = tpu.dynamic_rotate %33 by %c32_i32_46 dim 1 : vector<2x256xf32>, i32 -> vector<2x256xf32>
    %210 = vector.extract_strided_slice %107 {offsets = [0, 10], sizes = [2, 1], strides = [1, 1]} : vector<2x49xf32> to vector<2x1xf32>
    %211 = arith.andi %46, %91 : vector<1x256xi1>
    %212 = vector.broadcast %210 : vector<2x1xf32> to vector<2x256xf32>
    %213 = arith.mulf %209, %212 : vector<2x256xf32>
    %cst_47 = arith.constant 0.000000e+00 : f32
    %214 = vector.shape_cast %211 : vector<1x256xi1> to vector<1x256xi1>
    %215 = vector.broadcast %214 : vector<1x256xi1> to vector<2x256xi1>
    %216 = vector.broadcast %cst_47 : f32 to vector<2x256xf32>
    %217 = arith.select %215, %213, %216 : vector<2x256xi1>, vector<2x256xf32>
    %218 = arith.addf %208, %217 : vector<2x256xf32>
    %c31_i32 = arith.constant 31 : i32
    %219 = tpu.dynamic_rotate %33 by %c31_i32 dim 1 : vector<2x256xf32>, i32 -> vector<2x256xf32>
    %220 = vector.extract_strided_slice %107 {offsets = [0, 11], sizes = [2, 1], strides = [1, 1]} : vector<2x49xf32> to vector<2x1xf32>
    %221 = arith.andi %46, %96 : vector<1x256xi1>
    %222 = vector.broadcast %220 : vector<2x1xf32> to vector<2x256xf32>
    %223 = arith.mulf %219, %222 : vector<2x256xf32>
    %cst_48 = arith.constant 0.000000e+00 : f32
    %224 = vector.shape_cast %221 : vector<1x256xi1> to vector<1x256xi1>
    %225 = vector.broadcast %224 : vector<1x256xi1> to vector<2x256xi1>
    %226 = vector.broadcast %cst_48 : f32 to vector<2x256xf32>
    %227 = arith.select %225, %223, %226 : vector<2x256xi1>, vector<2x256xf32>
    %228 = arith.addf %218, %227 : vector<2x256xf32>
    %c30_i32 = arith.constant 30 : i32
    %229 = tpu.dynamic_rotate %33 by %c30_i32 dim 1 : vector<2x256xf32>, i32 -> vector<2x256xf32>
    %230 = vector.extract_strided_slice %107 {offsets = [0, 12], sizes = [2, 1], strides = [1, 1]} : vector<2x49xf32> to vector<2x1xf32>
    %231 = arith.andi %46, %101 : vector<1x256xi1>
    %232 = vector.broadcast %230 : vector<2x1xf32> to vector<2x256xf32>
    %233 = arith.mulf %229, %232 : vector<2x256xf32>
    %cst_49 = arith.constant 0.000000e+00 : f32
    %234 = vector.shape_cast %231 : vector<1x256xi1> to vector<1x256xi1>
    %235 = vector.broadcast %234 : vector<1x256xi1> to vector<2x256xi1>
    %236 = vector.broadcast %cst_49 : f32 to vector<2x256xf32>
    %237 = arith.select %235, %233, %236 : vector<2x256xi1>, vector<2x256xf32>
    %238 = arith.addf %228, %237 : vector<2x256xf32>
    %c29_i32 = arith.constant 29 : i32
    %239 = tpu.dynamic_rotate %33 by %c29_i32 dim 1 : vector<2x256xf32>, i32 -> vector<2x256xf32>
    %240 = vector.extract_strided_slice %107 {offsets = [0, 13], sizes = [2, 1], strides = [1, 1]} : vector<2x49xf32> to vector<2x1xf32>
    %241 = arith.andi %46, %106 : vector<1x256xi1>
    %242 = vector.broadcast %240 : vector<2x1xf32> to vector<2x256xf32>
    %243 = arith.mulf %239, %242 : vector<2x256xf32>
    %cst_50 = arith.constant 0.000000e+00 : f32
    %244 = vector.shape_cast %241 : vector<1x256xi1> to vector<1x256xi1>
    %245 = vector.broadcast %244 : vector<1x256xi1> to vector<2x256xi1>
    %246 = vector.broadcast %cst_50 : f32 to vector<2x256xf32>
    %247 = arith.select %245, %243, %246 : vector<2x256xi1>, vector<2x256xf32>
    %248 = arith.addf %238, %247 : vector<2x256xf32>
    %c19_i32 = arith.constant 19 : i32
    %249 = tpu.dynamic_rotate %33 by %c19_i32 dim 1 : vector<2x256xf32>, i32 -> vector<2x256xf32>
    %250 = vector.extract_strided_slice %107 {offsets = [0, 14], sizes = [2, 1], strides = [1, 1]} : vector<2x49xf32> to vector<2x1xf32>
    %251 = arith.andi %51, %76 : vector<1x256xi1>
    %252 = vector.broadcast %250 : vector<2x1xf32> to vector<2x256xf32>
    %253 = arith.mulf %249, %252 : vector<2x256xf32>
    %cst_51 = arith.constant 0.000000e+00 : f32
    %254 = vector.shape_cast %251 : vector<1x256xi1> to vector<1x256xi1>
    %255 = vector.broadcast %254 : vector<1x256xi1> to vector<2x256xi1>
    %256 = vector.broadcast %cst_51 : f32 to vector<2x256xf32>
    %257 = arith.select %255, %253, %256 : vector<2x256xi1>, vector<2x256xf32>
    %258 = arith.addf %248, %257 : vector<2x256xf32>
    %c18_i32 = arith.constant 18 : i32
    %259 = tpu.dynamic_rotate %33 by %c18_i32 dim 1 : vector<2x256xf32>, i32 -> vector<2x256xf32>
    %260 = vector.extract_strided_slice %107 {offsets = [0, 15], sizes = [2, 1], strides = [1, 1]} : vector<2x49xf32> to vector<2x1xf32>
    %261 = arith.andi %51, %81 : vector<1x256xi1>
    %262 = vector.broadcast %260 : vector<2x1xf32> to vector<2x256xf32>
    %263 = arith.mulf %259, %262 : vector<2x256xf32>
    %cst_52 = arith.constant 0.000000e+00 : f32
    %264 = vector.shape_cast %261 : vector<1x256xi1> to vector<1x256xi1>
    %265 = vector.broadcast %264 : vector<1x256xi1> to vector<2x256xi1>
    %266 = vector.broadcast %cst_52 : f32 to vector<2x256xf32>
    %267 = arith.select %265, %263, %266 : vector<2x256xi1>, vector<2x256xf32>
    %268 = arith.addf %258, %267 : vector<2x256xf32>
    %c17_i32 = arith.constant 17 : i32
    %269 = tpu.dynamic_rotate %33 by %c17_i32 dim 1 : vector<2x256xf32>, i32 -> vector<2x256xf32>
    %270 = vector.extract_strided_slice %107 {offsets = [0, 16], sizes = [2, 1], strides = [1, 1]} : vector<2x49xf32> to vector<2x1xf32>
    %271 = arith.andi %51, %86 : vector<1x256xi1>
    %272 = vector.broadcast %270 : vector<2x1xf32> to vector<2x256xf32>
    %273 = arith.mulf %269, %272 : vector<2x256xf32>
    %cst_53 = arith.constant 0.000000e+00 : f32
    %274 = vector.shape_cast %271 : vector<1x256xi1> to vector<1x256xi1>
    %275 = vector.broadcast %274 : vector<1x256xi1> to vector<2x256xi1>
    %276 = vector.broadcast %cst_53 : f32 to vector<2x256xf32>
    %277 = arith.select %275, %273, %276 : vector<2x256xi1>, vector<2x256xf32>
    %278 = arith.addf %268, %277 : vector<2x256xf32>
    %c16_i32_54 = arith.constant 16 : i32
    %279 = tpu.dynamic_rotate %33 by %c16_i32_54 dim 1 : vector<2x256xf32>, i32 -> vector<2x256xf32>
    %280 = vector.extract_strided_slice %107 {offsets = [0, 17], sizes = [2, 1], strides = [1, 1]} : vector<2x49xf32> to vector<2x1xf32>
    %281 = arith.andi %51, %91 : vector<1x256xi1>
    %282 = vector.broadcast %280 : vector<2x1xf32> to vector<2x256xf32>
    %283 = arith.mulf %279, %282 : vector<2x256xf32>
    %cst_55 = arith.constant 0.000000e+00 : f32
    %284 = vector.shape_cast %281 : vector<1x256xi1> to vector<1x256xi1>
    %285 = vector.broadcast %284 : vector<1x256xi1> to vector<2x256xi1>
    %286 = vector.broadcast %cst_55 : f32 to vector<2x256xf32>
    %287 = arith.select %285, %283, %286 : vector<2x256xi1>, vector<2x256xf32>
    %288 = arith.addf %278, %287 : vector<2x256xf32>
    %c15_i32_56 = arith.constant 15 : i32
    %289 = tpu.dynamic_rotate %33 by %c15_i32_56 dim 1 : vector<2x256xf32>, i32 -> vector<2x256xf32>
    %290 = vector.extract_strided_slice %107 {offsets = [0, 18], sizes = [2, 1], strides = [1, 1]} : vector<2x49xf32> to vector<2x1xf32>
    %291 = arith.andi %51, %96 : vector<1x256xi1>
    %292 = vector.broadcast %290 : vector<2x1xf32> to vector<2x256xf32>
    %293 = arith.mulf %289, %292 : vector<2x256xf32>
    %cst_57 = arith.constant 0.000000e+00 : f32
    %294 = vector.shape_cast %291 : vector<1x256xi1> to vector<1x256xi1>
    %295 = vector.broadcast %294 : vector<1x256xi1> to vector<2x256xi1>
    %296 = vector.broadcast %cst_57 : f32 to vector<2x256xf32>
    %297 = arith.select %295, %293, %296 : vector<2x256xi1>, vector<2x256xf32>
    %298 = arith.addf %288, %297 : vector<2x256xf32>
    %c14_i32_58 = arith.constant 14 : i32
    %299 = tpu.dynamic_rotate %33 by %c14_i32_58 dim 1 : vector<2x256xf32>, i32 -> vector<2x256xf32>
    %300 = vector.extract_strided_slice %107 {offsets = [0, 19], sizes = [2, 1], strides = [1, 1]} : vector<2x49xf32> to vector<2x1xf32>
    %301 = arith.andi %51, %101 : vector<1x256xi1>
    %302 = vector.broadcast %300 : vector<2x1xf32> to vector<2x256xf32>
    %303 = arith.mulf %299, %302 : vector<2x256xf32>
    %cst_59 = arith.constant 0.000000e+00 : f32
    %304 = vector.shape_cast %301 : vector<1x256xi1> to vector<1x256xi1>
    %305 = vector.broadcast %304 : vector<1x256xi1> to vector<2x256xi1>
    %306 = vector.broadcast %cst_59 : f32 to vector<2x256xf32>
    %307 = arith.select %305, %303, %306 : vector<2x256xi1>, vector<2x256xf32>
    %308 = arith.addf %298, %307 : vector<2x256xf32>
    %c13_i32_60 = arith.constant 13 : i32
    %309 = tpu.dynamic_rotate %33 by %c13_i32_60 dim 1 : vector<2x256xf32>, i32 -> vector<2x256xf32>
    %310 = vector.extract_strided_slice %107 {offsets = [0, 20], sizes = [2, 1], strides = [1, 1]} : vector<2x49xf32> to vector<2x1xf32>
    %311 = arith.andi %51, %106 : vector<1x256xi1>
    %312 = vector.broadcast %310 : vector<2x1xf32> to vector<2x256xf32>
    %313 = arith.mulf %309, %312 : vector<2x256xf32>
    %cst_61 = arith.constant 0.000000e+00 : f32
    %314 = vector.shape_cast %311 : vector<1x256xi1> to vector<1x256xi1>
    %315 = vector.broadcast %314 : vector<1x256xi1> to vector<2x256xi1>
    %316 = vector.broadcast %cst_61 : f32 to vector<2x256xf32>
    %317 = arith.select %315, %313, %316 : vector<2x256xi1>, vector<2x256xf32>
    %318 = arith.addf %308, %317 : vector<2x256xf32>
    %c3_i32_62 = arith.constant 3 : i32
    %319 = tpu.dynamic_rotate %33 by %c3_i32_62 dim 1 : vector<2x256xf32>, i32 -> vector<2x256xf32>
    %320 = vector.extract_strided_slice %107 {offsets = [0, 21], sizes = [2, 1], strides = [1, 1]} : vector<2x49xf32> to vector<2x1xf32>
    %321 = arith.andi %56, %76 : vector<1x256xi1>
    %322 = vector.broadcast %320 : vector<2x1xf32> to vector<2x256xf32>
    %323 = arith.mulf %319, %322 : vector<2x256xf32>
    %cst_63 = arith.constant 0.000000e+00 : f32
    %324 = vector.shape_cast %321 : vector<1x256xi1> to vector<1x256xi1>
    %325 = vector.broadcast %324 : vector<1x256xi1> to vector<2x256xi1>
    %326 = vector.broadcast %cst_63 : f32 to vector<2x256xf32>
    %327 = arith.select %325, %323, %326 : vector<2x256xi1>, vector<2x256xf32>
    %328 = arith.addf %318, %327 : vector<2x256xf32>
    %c2_i32_64 = arith.constant 2 : i32
    %329 = tpu.dynamic_rotate %33 by %c2_i32_64 dim 1 : vector<2x256xf32>, i32 -> vector<2x256xf32>
    %330 = vector.extract_strided_slice %107 {offsets = [0, 22], sizes = [2, 1], strides = [1, 1]} : vector<2x49xf32> to vector<2x1xf32>
    %331 = arith.andi %56, %81 : vector<1x256xi1>
    %332 = vector.broadcast %330 : vector<2x1xf32> to vector<2x256xf32>
    %333 = arith.mulf %329, %332 : vector<2x256xf32>
    %cst_65 = arith.constant 0.000000e+00 : f32
    %334 = vector.shape_cast %331 : vector<1x256xi1> to vector<1x256xi1>
    %335 = vector.broadcast %334 : vector<1x256xi1> to vector<2x256xi1>
    %336 = vector.broadcast %cst_65 : f32 to vector<2x256xf32>
    %337 = arith.select %335, %333, %336 : vector<2x256xi1>, vector<2x256xf32>
    %338 = arith.addf %328, %337 : vector<2x256xf32>
    %c1_i32_66 = arith.constant 1 : i32
    %339 = tpu.dynamic_rotate %33 by %c1_i32_66 dim 1 : vector<2x256xf32>, i32 -> vector<2x256xf32>
    %340 = vector.extract_strided_slice %107 {offsets = [0, 23], sizes = [2, 1], strides = [1, 1]} : vector<2x49xf32> to vector<2x1xf32>
    %341 = arith.andi %56, %86 : vector<1x256xi1>
    %342 = vector.broadcast %340 : vector<2x1xf32> to vector<2x256xf32>
    %343 = arith.mulf %339, %342 : vector<2x256xf32>
    %cst_67 = arith.constant 0.000000e+00 : f32
    %344 = vector.shape_cast %341 : vector<1x256xi1> to vector<1x256xi1>
    %345 = vector.broadcast %344 : vector<1x256xi1> to vector<2x256xi1>
    %346 = vector.broadcast %cst_67 : f32 to vector<2x256xf32>
    %347 = arith.select %345, %343, %346 : vector<2x256xi1>, vector<2x256xf32>
    %348 = arith.addf %338, %347 : vector<2x256xf32>
    %349 = vector.extract_strided_slice %107 {offsets = [0, 24], sizes = [2, 1], strides = [1, 1]} : vector<2x49xf32> to vector<2x1xf32>
    %350 = arith.andi %56, %91 : vector<1x256xi1>
    %351 = vector.broadcast %349 : vector<2x1xf32> to vector<2x256xf32>
    %352 = arith.mulf %33, %351 : vector<2x256xf32>
    %cst_68 = arith.constant 0.000000e+00 : f32
    %353 = vector.shape_cast %350 : vector<1x256xi1> to vector<1x256xi1>
    %354 = vector.broadcast %353 : vector<1x256xi1> to vector<2x256xi1>
    %355 = vector.broadcast %cst_68 : f32 to vector<2x256xf32>
    %356 = arith.select %354, %352, %355 : vector<2x256xi1>, vector<2x256xf32>
    %357 = arith.addf %348, %356 : vector<2x256xf32>
    %c255_i32 = arith.constant 255 : i32
    %358 = tpu.dynamic_rotate %33 by %c255_i32 dim 1 : vector<2x256xf32>, i32 -> vector<2x256xf32>
    %359 = vector.extract_strided_slice %107 {offsets = [0, 25], sizes = [2, 1], strides = [1, 1]} : vector<2x49xf32> to vector<2x1xf32>
    %360 = arith.andi %56, %96 : vector<1x256xi1>
    %361 = vector.broadcast %359 : vector<2x1xf32> to vector<2x256xf32>
    %362 = arith.mulf %358, %361 : vector<2x256xf32>
    %cst_69 = arith.constant 0.000000e+00 : f32
    %363 = vector.shape_cast %360 : vector<1x256xi1> to vector<1x256xi1>
    %364 = vector.broadcast %363 : vector<1x256xi1> to vector<2x256xi1>
    %365 = vector.broadcast %cst_69 : f32 to vector<2x256xf32>
    %366 = arith.select %364, %362, %365 : vector<2x256xi1>, vector<2x256xf32>
    %367 = arith.addf %357, %366 : vector<2x256xf32>
    %c254_i32 = arith.constant 254 : i32
    %368 = tpu.dynamic_rotate %33 by %c254_i32 dim 1 : vector<2x256xf32>, i32 -> vector<2x256xf32>
    %369 = vector.extract_strided_slice %107 {offsets = [0, 26], sizes = [2, 1], strides = [1, 1]} : vector<2x49xf32> to vector<2x1xf32>
    %370 = arith.andi %56, %101 : vector<1x256xi1>
    %371 = vector.broadcast %369 : vector<2x1xf32> to vector<2x256xf32>
    %372 = arith.mulf %368, %371 : vector<2x256xf32>
    %cst_70 = arith.constant 0.000000e+00 : f32
    %373 = vector.shape_cast %370 : vector<1x256xi1> to vector<1x256xi1>
    %374 = vector.broadcast %373 : vector<1x256xi1> to vector<2x256xi1>
    %375 = vector.broadcast %cst_70 : f32 to vector<2x256xf32>
    %376 = arith.select %374, %372, %375 : vector<2x256xi1>, vector<2x256xf32>
    %377 = arith.addf %367, %376 : vector<2x256xf32>
    %c253_i32 = arith.constant 253 : i32
    %378 = tpu.dynamic_rotate %33 by %c253_i32 dim 1 : vector<2x256xf32>, i32 -> vector<2x256xf32>
    %379 = vector.extract_strided_slice %107 {offsets = [0, 27], sizes = [2, 1], strides = [1, 1]} : vector<2x49xf32> to vector<2x1xf32>
    %380 = arith.andi %56, %106 : vector<1x256xi1>
    %381 = vector.broadcast %379 : vector<2x1xf32> to vector<2x256xf32>
    %382 = arith.mulf %378, %381 : vector<2x256xf32>
    %cst_71 = arith.constant 0.000000e+00 : f32
    %383 = vector.shape_cast %380 : vector<1x256xi1> to vector<1x256xi1>
    %384 = vector.broadcast %383 : vector<1x256xi1> to vector<2x256xi1>
    %385 = vector.broadcast %cst_71 : f32 to vector<2x256xf32>
    %386 = arith.select %384, %382, %385 : vector<2x256xi1>, vector<2x256xf32>
    %387 = arith.addf %377, %386 : vector<2x256xf32>
    %c243_i32 = arith.constant 243 : i32
    %388 = tpu.dynamic_rotate %33 by %c243_i32 dim 1 : vector<2x256xf32>, i32 -> vector<2x256xf32>
    %389 = vector.extract_strided_slice %107 {offsets = [0, 28], sizes = [2, 1], strides = [1, 1]} : vector<2x49xf32> to vector<2x1xf32>
    %390 = arith.andi %61, %76 : vector<1x256xi1>
    %391 = vector.broadcast %389 : vector<2x1xf32> to vector<2x256xf32>
    %392 = arith.mulf %388, %391 : vector<2x256xf32>
    %cst_72 = arith.constant 0.000000e+00 : f32
    %393 = vector.shape_cast %390 : vector<1x256xi1> to vector<1x256xi1>
    %394 = vector.broadcast %393 : vector<1x256xi1> to vector<2x256xi1>
    %395 = vector.broadcast %cst_72 : f32 to vector<2x256xf32>
    %396 = arith.select %394, %392, %395 : vector<2x256xi1>, vector<2x256xf32>
    %397 = arith.addf %387, %396 : vector<2x256xf32>
    %c242_i32 = arith.constant 242 : i32
    %398 = tpu.dynamic_rotate %33 by %c242_i32 dim 1 : vector<2x256xf32>, i32 -> vector<2x256xf32>
    %399 = vector.extract_strided_slice %107 {offsets = [0, 29], sizes = [2, 1], strides = [1, 1]} : vector<2x49xf32> to vector<2x1xf32>
    %400 = arith.andi %61, %81 : vector<1x256xi1>
    %401 = vector.broadcast %399 : vector<2x1xf32> to vector<2x256xf32>
    %402 = arith.mulf %398, %401 : vector<2x256xf32>
    %cst_73 = arith.constant 0.000000e+00 : f32
    %403 = vector.shape_cast %400 : vector<1x256xi1> to vector<1x256xi1>
    %404 = vector.broadcast %403 : vector<1x256xi1> to vector<2x256xi1>
    %405 = vector.broadcast %cst_73 : f32 to vector<2x256xf32>
    %406 = arith.select %404, %402, %405 : vector<2x256xi1>, vector<2x256xf32>
    %407 = arith.addf %397, %406 : vector<2x256xf32>
    %c241_i32 = arith.constant 241 : i32
    %408 = tpu.dynamic_rotate %33 by %c241_i32 dim 1 : vector<2x256xf32>, i32 -> vector<2x256xf32>
    %409 = vector.extract_strided_slice %107 {offsets = [0, 30], sizes = [2, 1], strides = [1, 1]} : vector<2x49xf32> to vector<2x1xf32>
    %410 = arith.andi %61, %86 : vector<1x256xi1>
    %411 = vector.broadcast %409 : vector<2x1xf32> to vector<2x256xf32>
    %412 = arith.mulf %408, %411 : vector<2x256xf32>
    %cst_74 = arith.constant 0.000000e+00 : f32
    %413 = vector.shape_cast %410 : vector<1x256xi1> to vector<1x256xi1>
    %414 = vector.broadcast %413 : vector<1x256xi1> to vector<2x256xi1>
    %415 = vector.broadcast %cst_74 : f32 to vector<2x256xf32>
    %416 = arith.select %414, %412, %415 : vector<2x256xi1>, vector<2x256xf32>
    %417 = arith.addf %407, %416 : vector<2x256xf32>
    %c240_i32_75 = arith.constant 240 : i32
    %418 = tpu.dynamic_rotate %33 by %c240_i32_75 dim 1 : vector<2x256xf32>, i32 -> vector<2x256xf32>
    %419 = vector.extract_strided_slice %107 {offsets = [0, 31], sizes = [2, 1], strides = [1, 1]} : vector<2x49xf32> to vector<2x1xf32>
    %420 = arith.andi %61, %91 : vector<1x256xi1>
    %421 = vector.broadcast %419 : vector<2x1xf32> to vector<2x256xf32>
    %422 = arith.mulf %418, %421 : vector<2x256xf32>
    %cst_76 = arith.constant 0.000000e+00 : f32
    %423 = vector.shape_cast %420 : vector<1x256xi1> to vector<1x256xi1>
    %424 = vector.broadcast %423 : vector<1x256xi1> to vector<2x256xi1>
    %425 = vector.broadcast %cst_76 : f32 to vector<2x256xf32>
    %426 = arith.select %424, %422, %425 : vector<2x256xi1>, vector<2x256xf32>
    %427 = arith.addf %417, %426 : vector<2x256xf32>
    %c239_i32 = arith.constant 239 : i32
    %428 = tpu.dynamic_rotate %33 by %c239_i32 dim 1 : vector<2x256xf32>, i32 -> vector<2x256xf32>
    %429 = vector.extract_strided_slice %107 {offsets = [0, 32], sizes = [2, 1], strides = [1, 1]} : vector<2x49xf32> to vector<2x1xf32>
    %430 = arith.andi %61, %96 : vector<1x256xi1>
    %431 = vector.broadcast %429 : vector<2x1xf32> to vector<2x256xf32>
    %432 = arith.mulf %428, %431 : vector<2x256xf32>
    %cst_77 = arith.constant 0.000000e+00 : f32
    %433 = vector.shape_cast %430 : vector<1x256xi1> to vector<1x256xi1>
    %434 = vector.broadcast %433 : vector<1x256xi1> to vector<2x256xi1>
    %435 = vector.broadcast %cst_77 : f32 to vector<2x256xf32>
    %436 = arith.select %434, %432, %435 : vector<2x256xi1>, vector<2x256xf32>
    %437 = arith.addf %427, %436 : vector<2x256xf32>
    %c238_i32 = arith.constant 238 : i32
    %438 = tpu.dynamic_rotate %33 by %c238_i32 dim 1 : vector<2x256xf32>, i32 -> vector<2x256xf32>
    %439 = vector.extract_strided_slice %107 {offsets = [0, 33], sizes = [2, 1], strides = [1, 1]} : vector<2x49xf32> to vector<2x1xf32>
    %440 = arith.andi %61, %101 : vector<1x256xi1>
    %441 = vector.broadcast %439 : vector<2x1xf32> to vector<2x256xf32>
    %442 = arith.mulf %438, %441 : vector<2x256xf32>
    %cst_78 = arith.constant 0.000000e+00 : f32
    %443 = vector.shape_cast %440 : vector<1x256xi1> to vector<1x256xi1>
    %444 = vector.broadcast %443 : vector<1x256xi1> to vector<2x256xi1>
    %445 = vector.broadcast %cst_78 : f32 to vector<2x256xf32>
    %446 = arith.select %444, %442, %445 : vector<2x256xi1>, vector<2x256xf32>
    %447 = arith.addf %437, %446 : vector<2x256xf32>
    %c237_i32 = arith.constant 237 : i32
    %448 = tpu.dynamic_rotate %33 by %c237_i32 dim 1 : vector<2x256xf32>, i32 -> vector<2x256xf32>
    %449 = vector.extract_strided_slice %107 {offsets = [0, 34], sizes = [2, 1], strides = [1, 1]} : vector<2x49xf32> to vector<2x1xf32>
    %450 = arith.andi %61, %106 : vector<1x256xi1>
    %451 = vector.broadcast %449 : vector<2x1xf32> to vector<2x256xf32>
    %452 = arith.mulf %448, %451 : vector<2x256xf32>
    %cst_79 = arith.constant 0.000000e+00 : f32
    %453 = vector.shape_cast %450 : vector<1x256xi1> to vector<1x256xi1>
    %454 = vector.broadcast %453 : vector<1x256xi1> to vector<2x256xi1>
    %455 = vector.broadcast %cst_79 : f32 to vector<2x256xf32>
    %456 = arith.select %454, %452, %455 : vector<2x256xi1>, vector<2x256xf32>
    %457 = arith.addf %447, %456 : vector<2x256xf32>
    %c227_i32 = arith.constant 227 : i32
    %458 = tpu.dynamic_rotate %33 by %c227_i32 dim 1 : vector<2x256xf32>, i32 -> vector<2x256xf32>
    %459 = vector.extract_strided_slice %107 {offsets = [0, 35], sizes = [2, 1], strides = [1, 1]} : vector<2x49xf32> to vector<2x1xf32>
    %460 = arith.andi %66, %76 : vector<1x256xi1>
    %461 = vector.broadcast %459 : vector<2x1xf32> to vector<2x256xf32>
    %462 = arith.mulf %458, %461 : vector<2x256xf32>
    %cst_80 = arith.constant 0.000000e+00 : f32
    %463 = vector.shape_cast %460 : vector<1x256xi1> to vector<1x256xi1>
    %464 = vector.broadcast %463 : vector<1x256xi1> to vector<2x256xi1>
    %465 = vector.broadcast %cst_80 : f32 to vector<2x256xf32>
    %466 = arith.select %464, %462, %465 : vector<2x256xi1>, vector<2x256xf32>
    %467 = arith.addf %457, %466 : vector<2x256xf32>
    %c226_i32 = arith.constant 226 : i32
    %468 = tpu.dynamic_rotate %33 by %c226_i32 dim 1 : vector<2x256xf32>, i32 -> vector<2x256xf32>
    %469 = vector.extract_strided_slice %107 {offsets = [0, 36], sizes = [2, 1], strides = [1, 1]} : vector<2x49xf32> to vector<2x1xf32>
    %470 = arith.andi %66, %81 : vector<1x256xi1>
    %471 = vector.broadcast %469 : vector<2x1xf32> to vector<2x256xf32>
    %472 = arith.mulf %468, %471 : vector<2x256xf32>
    %cst_81 = arith.constant 0.000000e+00 : f32
    %473 = vector.shape_cast %470 : vector<1x256xi1> to vector<1x256xi1>
    %474 = vector.broadcast %473 : vector<1x256xi1> to vector<2x256xi1>
    %475 = vector.broadcast %cst_81 : f32 to vector<2x256xf32>
    %476 = arith.select %474, %472, %475 : vector<2x256xi1>, vector<2x256xf32>
    %477 = arith.addf %467, %476 : vector<2x256xf32>
    %c225_i32 = arith.constant 225 : i32
    %478 = tpu.dynamic_rotate %33 by %c225_i32 dim 1 : vector<2x256xf32>, i32 -> vector<2x256xf32>
    %479 = vector.extract_strided_slice %107 {offsets = [0, 37], sizes = [2, 1], strides = [1, 1]} : vector<2x49xf32> to vector<2x1xf32>
    %480 = arith.andi %66, %86 : vector<1x256xi1>
    %481 = vector.broadcast %479 : vector<2x1xf32> to vector<2x256xf32>
    %482 = arith.mulf %478, %481 : vector<2x256xf32>
    %cst_82 = arith.constant 0.000000e+00 : f32
    %483 = vector.shape_cast %480 : vector<1x256xi1> to vector<1x256xi1>
    %484 = vector.broadcast %483 : vector<1x256xi1> to vector<2x256xi1>
    %485 = vector.broadcast %cst_82 : f32 to vector<2x256xf32>
    %486 = arith.select %484, %482, %485 : vector<2x256xi1>, vector<2x256xf32>
    %487 = arith.addf %477, %486 : vector<2x256xf32>
    %c224_i32_83 = arith.constant 224 : i32
    %488 = tpu.dynamic_rotate %33 by %c224_i32_83 dim 1 : vector<2x256xf32>, i32 -> vector<2x256xf32>
    %489 = vector.extract_strided_slice %107 {offsets = [0, 38], sizes = [2, 1], strides = [1, 1]} : vector<2x49xf32> to vector<2x1xf32>
    %490 = arith.andi %66, %91 : vector<1x256xi1>
    %491 = vector.broadcast %489 : vector<2x1xf32> to vector<2x256xf32>
    %492 = arith.mulf %488, %491 : vector<2x256xf32>
    %cst_84 = arith.constant 0.000000e+00 : f32
    %493 = vector.shape_cast %490 : vector<1x256xi1> to vector<1x256xi1>
    %494 = vector.broadcast %493 : vector<1x256xi1> to vector<2x256xi1>
    %495 = vector.broadcast %cst_84 : f32 to vector<2x256xf32>
    %496 = arith.select %494, %492, %495 : vector<2x256xi1>, vector<2x256xf32>
    %497 = arith.addf %487, %496 : vector<2x256xf32>
    %c223_i32 = arith.constant 223 : i32
    %498 = tpu.dynamic_rotate %33 by %c223_i32 dim 1 : vector<2x256xf32>, i32 -> vector<2x256xf32>
    %499 = vector.extract_strided_slice %107 {offsets = [0, 39], sizes = [2, 1], strides = [1, 1]} : vector<2x49xf32> to vector<2x1xf32>
    %500 = arith.andi %66, %96 : vector<1x256xi1>
    %501 = vector.broadcast %499 : vector<2x1xf32> to vector<2x256xf32>
    %502 = arith.mulf %498, %501 : vector<2x256xf32>
    %cst_85 = arith.constant 0.000000e+00 : f32
    %503 = vector.shape_cast %500 : vector<1x256xi1> to vector<1x256xi1>
    %504 = vector.broadcast %503 : vector<1x256xi1> to vector<2x256xi1>
    %505 = vector.broadcast %cst_85 : f32 to vector<2x256xf32>
    %506 = arith.select %504, %502, %505 : vector<2x256xi1>, vector<2x256xf32>
    %507 = arith.addf %497, %506 : vector<2x256xf32>
    %c222_i32 = arith.constant 222 : i32
    %508 = tpu.dynamic_rotate %33 by %c222_i32 dim 1 : vector<2x256xf32>, i32 -> vector<2x256xf32>
    %509 = vector.extract_strided_slice %107 {offsets = [0, 40], sizes = [2, 1], strides = [1, 1]} : vector<2x49xf32> to vector<2x1xf32>
    %510 = arith.andi %66, %101 : vector<1x256xi1>
    %511 = vector.broadcast %509 : vector<2x1xf32> to vector<2x256xf32>
    %512 = arith.mulf %508, %511 : vector<2x256xf32>
    %cst_86 = arith.constant 0.000000e+00 : f32
    %513 = vector.shape_cast %510 : vector<1x256xi1> to vector<1x256xi1>
    %514 = vector.broadcast %513 : vector<1x256xi1> to vector<2x256xi1>
    %515 = vector.broadcast %cst_86 : f32 to vector<2x256xf32>
    %516 = arith.select %514, %512, %515 : vector<2x256xi1>, vector<2x256xf32>
    %517 = arith.addf %507, %516 : vector<2x256xf32>
    %c221_i32 = arith.constant 221 : i32
    %518 = tpu.dynamic_rotate %33 by %c221_i32 dim 1 : vector<2x256xf32>, i32 -> vector<2x256xf32>
    %519 = vector.extract_strided_slice %107 {offsets = [0, 41], sizes = [2, 1], strides = [1, 1]} : vector<2x49xf32> to vector<2x1xf32>
    %520 = arith.andi %66, %106 : vector<1x256xi1>
    %521 = vector.broadcast %519 : vector<2x1xf32> to vector<2x256xf32>
    %522 = arith.mulf %518, %521 : vector<2x256xf32>
    %cst_87 = arith.constant 0.000000e+00 : f32
    %523 = vector.shape_cast %520 : vector<1x256xi1> to vector<1x256xi1>
    %524 = vector.broadcast %523 : vector<1x256xi1> to vector<2x256xi1>
    %525 = vector.broadcast %cst_87 : f32 to vector<2x256xf32>
    %526 = arith.select %524, %522, %525 : vector<2x256xi1>, vector<2x256xf32>
    %527 = arith.addf %517, %526 : vector<2x256xf32>
    %c211_i32 = arith.constant 211 : i32
    %528 = tpu.dynamic_rotate %33 by %c211_i32 dim 1 : vector<2x256xf32>, i32 -> vector<2x256xf32>
    %529 = vector.extract_strided_slice %107 {offsets = [0, 42], sizes = [2, 1], strides = [1, 1]} : vector<2x49xf32> to vector<2x1xf32>
    %530 = arith.andi %71, %76 : vector<1x256xi1>
    %531 = vector.broadcast %529 : vector<2x1xf32> to vector<2x256xf32>
    %532 = arith.mulf %528, %531 : vector<2x256xf32>
    %cst_88 = arith.constant 0.000000e+00 : f32
    %533 = vector.shape_cast %530 : vector<1x256xi1> to vector<1x256xi1>
    %534 = vector.broadcast %533 : vector<1x256xi1> to vector<2x256xi1>
    %535 = vector.broadcast %cst_88 : f32 to vector<2x256xf32>
    %536 = arith.select %534, %532, %535 : vector<2x256xi1>, vector<2x256xf32>
    %537 = arith.addf %527, %536 : vector<2x256xf32>
    %c210_i32 = arith.constant 210 : i32
    %538 = tpu.dynamic_rotate %33 by %c210_i32 dim 1 : vector<2x256xf32>, i32 -> vector<2x256xf32>
    %539 = vector.extract_strided_slice %107 {offsets = [0, 43], sizes = [2, 1], strides = [1, 1]} : vector<2x49xf32> to vector<2x1xf32>
    %540 = arith.andi %71, %81 : vector<1x256xi1>
    %541 = vector.broadcast %539 : vector<2x1xf32> to vector<2x256xf32>
    %542 = arith.mulf %538, %541 : vector<2x256xf32>
    %cst_89 = arith.constant 0.000000e+00 : f32
    %543 = vector.shape_cast %540 : vector<1x256xi1> to vector<1x256xi1>
    %544 = vector.broadcast %543 : vector<1x256xi1> to vector<2x256xi1>
    %545 = vector.broadcast %cst_89 : f32 to vector<2x256xf32>
    %546 = arith.select %544, %542, %545 : vector<2x256xi1>, vector<2x256xf32>
    %547 = arith.addf %537, %546 : vector<2x256xf32>
    %c209_i32 = arith.constant 209 : i32
    %548 = tpu.dynamic_rotate %33 by %c209_i32 dim 1 : vector<2x256xf32>, i32 -> vector<2x256xf32>
    %549 = vector.extract_strided_slice %107 {offsets = [0, 44], sizes = [2, 1], strides = [1, 1]} : vector<2x49xf32> to vector<2x1xf32>
    %550 = arith.andi %71, %86 : vector<1x256xi1>
    %551 = vector.broadcast %549 : vector<2x1xf32> to vector<2x256xf32>
    %552 = arith.mulf %548, %551 : vector<2x256xf32>
    %cst_90 = arith.constant 0.000000e+00 : f32
    %553 = vector.shape_cast %550 : vector<1x256xi1> to vector<1x256xi1>
    %554 = vector.broadcast %553 : vector<1x256xi1> to vector<2x256xi1>
    %555 = vector.broadcast %cst_90 : f32 to vector<2x256xf32>
    %556 = arith.select %554, %552, %555 : vector<2x256xi1>, vector<2x256xf32>
    %557 = arith.addf %547, %556 : vector<2x256xf32>
    %c208_i32_91 = arith.constant 208 : i32
    %558 = tpu.dynamic_rotate %33 by %c208_i32_91 dim 1 : vector<2x256xf32>, i32 -> vector<2x256xf32>
    %559 = vector.extract_strided_slice %107 {offsets = [0, 45], sizes = [2, 1], strides = [1, 1]} : vector<2x49xf32> to vector<2x1xf32>
    %560 = arith.andi %71, %91 : vector<1x256xi1>
    %561 = vector.broadcast %559 : vector<2x1xf32> to vector<2x256xf32>
    %562 = arith.mulf %558, %561 : vector<2x256xf32>
    %cst_92 = arith.constant 0.000000e+00 : f32
    %563 = vector.shape_cast %560 : vector<1x256xi1> to vector<1x256xi1>
    %564 = vector.broadcast %563 : vector<1x256xi1> to vector<2x256xi1>
    %565 = vector.broadcast %cst_92 : f32 to vector<2x256xf32>
    %566 = arith.select %564, %562, %565 : vector<2x256xi1>, vector<2x256xf32>
    %567 = arith.addf %557, %566 : vector<2x256xf32>
    %c207_i32 = arith.constant 207 : i32
    %568 = tpu.dynamic_rotate %33 by %c207_i32 dim 1 : vector<2x256xf32>, i32 -> vector<2x256xf32>
    %569 = vector.extract_strided_slice %107 {offsets = [0, 46], sizes = [2, 1], strides = [1, 1]} : vector<2x49xf32> to vector<2x1xf32>
    %570 = arith.andi %71, %96 : vector<1x256xi1>
    %571 = vector.broadcast %569 : vector<2x1xf32> to vector<2x256xf32>
    %572 = arith.mulf %568, %571 : vector<2x256xf32>
    %cst_93 = arith.constant 0.000000e+00 : f32
    %573 = vector.shape_cast %570 : vector<1x256xi1> to vector<1x256xi1>
    %574 = vector.broadcast %573 : vector<1x256xi1> to vector<2x256xi1>
    %575 = vector.broadcast %cst_93 : f32 to vector<2x256xf32>
    %576 = arith.select %574, %572, %575 : vector<2x256xi1>, vector<2x256xf32>
    %577 = arith.addf %567, %576 : vector<2x256xf32>
    %c206_i32 = arith.constant 206 : i32
    %578 = tpu.dynamic_rotate %33 by %c206_i32 dim 1 : vector<2x256xf32>, i32 -> vector<2x256xf32>
    %579 = vector.extract_strided_slice %107 {offsets = [0, 47], sizes = [2, 1], strides = [1, 1]} : vector<2x49xf32> to vector<2x1xf32>
    %580 = arith.andi %71, %101 : vector<1x256xi1>
    %581 = vector.broadcast %579 : vector<2x1xf32> to vector<2x256xf32>
    %582 = arith.mulf %578, %581 : vector<2x256xf32>
    %cst_94 = arith.constant 0.000000e+00 : f32
    %583 = vector.shape_cast %580 : vector<1x256xi1> to vector<1x256xi1>
    %584 = vector.broadcast %583 : vector<1x256xi1> to vector<2x256xi1>
    %585 = vector.broadcast %cst_94 : f32 to vector<2x256xf32>
    %586 = arith.select %584, %582, %585 : vector<2x256xi1>, vector<2x256xf32>
    %587 = arith.addf %577, %586 : vector<2x256xf32>
    %c205_i32 = arith.constant 205 : i32
    %588 = tpu.dynamic_rotate %33 by %c205_i32 dim 1 : vector<2x256xf32>, i32 -> vector<2x256xf32>
    %589 = vector.extract_strided_slice %107 {offsets = [0, 48], sizes = [2, 1], strides = [1, 1]} : vector<2x49xf32> to vector<2x1xf32>
    %590 = arith.andi %71, %106 : vector<1x256xi1>
    %591 = vector.broadcast %589 : vector<2x1xf32> to vector<2x256xf32>
    %592 = arith.mulf %588, %591 : vector<2x256xf32>
    %cst_95 = arith.constant 0.000000e+00 : f32
    %593 = vector.shape_cast %590 : vector<1x256xi1> to vector<1x256xi1>
    %594 = vector.broadcast %593 : vector<1x256xi1> to vector<2x256xi1>
    %595 = vector.broadcast %cst_95 : f32 to vector<2x256xf32>
    %596 = arith.select %594, %592, %595 : vector<2x256xi1>, vector<2x256xf32>
    %597 = arith.addf %587, %596 : vector<2x256xf32>
    %cst_96 = arith.constant dense<0.000000e+00> : vector<256xf32>
    %598 = vector.multi_reduction <add>, %597, %cst_96 [0] : vector<2x256xf32> to vector<256xf32>
    %599 = vector.shape_cast %598 : vector<256xf32> to vector<1x256xf32>
    %c0_97 = arith.constant 0 : index
    %600 = memref.load %arg5[%c0_97] : memref<1xf32, #tpu.memory_space<smem>>
    %601 = vector.broadcast %600 : f32 to vector<1x256xf32>
    %602 = arith.addf %599, %601 : vector<1x256xf32>
    %cst_98 = arith.constant 0.000000e+00 : f32
    %603 = vector.broadcast %cst_98 : f32 to vector<1x256xf32>
    %604 = arith.subf %603, %602 : vector<1x256xf32>
    %605 = math.exp %604 : vector<1x256xf32>
    %cst_99 = arith.constant 1.000000e+00 : f32
    %606 = vector.broadcast %cst_99 : f32 to vector<1x256xf32>
    %607 = arith.addf %606, %605 : vector<1x256xf32>
    %cst_100 = arith.constant 1.000000e+00 : f32
    %608 = vector.broadcast %cst_100 : f32 to vector<1x256xf32>
    %609 = arith.divf %608, %607 : vector<1x256xf32>
    %610 = vector.broadcast %609 : vector<1x256xf32> to vector<16x256xf32>
    %611 = arith.mulf %26, %610 : vector<16x256xf32>
    %612 = arith.addf %611, %1 : vector<16x256xf32>
    %c0_101 = arith.constant 0 : index
    %c0_102 = arith.constant 0 : index
    %c0_103 = arith.constant 0 : index
    %613 = vector.load %arg6[%c0_101, %c0_102, %c0_103] : memref<1x16x256xf32, #tpu.memory_space<vmem>>, vector<1x16x256xf32>
    %614 = vector.shape_cast %613 : vector<1x16x256xf32> to vector<16x256xf32>
    %615 = vector.shape_cast %612 : vector<16x256xf32> to vector<1x16x256xf32>
    tpu.vector_store %arg6[%c0_101, %c0_102, %c0_103], %615 {strides = array<i32>} : memref<1x16x256xf32, #tpu.memory_space<vmem>>, vector<1x16x256xf32>,
    return
  }
  func.func @transform_0(%arg0: i32) -> (i32, i32, i32) {
    %c0_i32 = arith.constant 0 : i32
    %c0_i32_0 = arith.constant 0 : i32
    %c0_i32_1 = arith.constant 0 : i32
    return %arg0, %c0_i32, %c0_i32_0 : i32, i32, i32
  }
  func.func @transform_1(%arg0: i32) -> (i32, i32) {
    %c0_i32 = arith.constant 0 : i32
    %c0_i32_0 = arith.constant 0 : i32
    %c0_i32_1 = arith.constant 0 : i32
    return %c0_i32, %c0_i32_0 : i32, i32
  }
  func.func @transform_2(%arg0: i32) -> (i32, i32) {
    %c0_i32 = arith.constant 0 : i32
    %c0_i32_0 = arith.constant 0 : i32
    %c0_i32_1 = arith.constant 0 : i32
    return %c0_i32, %c0_i32_0 : i32, i32
  }
  func.func @transform_3(%arg0: i32) -> (i32, i32) {
    %c0_i32 = arith.constant 0 : i32
    %c0_i32_0 = arith.constant 0 : i32
    %c0_i32_1 = arith.constant 0 : i32
    return %c0_i32, %c0_i32_0 : i32, i32
  }
  func.func @transform_4(%arg0: i32) -> i32 {
    %c0_i32 = arith.constant 0 : i32
    %c0_i32_0 = arith.constant 0 : i32
    return %c0_i32 : i32
  }
  func.func @transform_5(%arg0: i32) -> (i32, i32, i32) {
    %c0_i32 = arith.constant 0 : i32
    %c0_i32_0 = arith.constant 0 : i32
    %c0_i32_1 = arith.constant 0 : i32
    return %arg0, %c0_i32, %c0_i32_0 : i32, i32, i32
  }
}

</mosaic_0001>

<bundles_post_ra>
// kernel: tpu_custom_call.1
= control target key start
LH: loop header
LB: loop body
LE: loop exit
PB: predicated region body
PF: predicated region fallthrough
CT: control target
= control target key end

     0   :  { %s3552_s0 = inlined_call_operand.hbm [shape: f32[2,16,256], index: 0, kind: input, shape index: {}]   ;;  %s3553_s1 = inlined_call_operand.vmem [shape: f32[4,16], index: 1, kind: input, shape index: {}]   ;;  %s3554_s2 = inlined_call_operand.vmem [shape: f32[16,4], index: 2, kind: input, shape index: {}]   ;;  %s3555_s3 = inlined_call_operand.vmem [shape: f32[2,49], index: 3, kind: input, shape index: {}]   ;;  %s3556_s4 = inlined_call_operand.<no memory space> [shape: f32[1], index: 4, kind: input, shape index: {}]   ;;  %s3557_s5 = inlined_call_operand.hbm [shape: f32[2,16,256], index: 5, kind: output, shape index: {}]  }
   0x1   :  { %10 = sst [smem:[#allocation2]] %s3556_s4 }
   0x2   :  { %11 = vsyncpa [#allocation4], 0 }
   0x3   :  { %13 = vsyncpa [#allocation4 + $0x1], 0 }
   0x4   :  { %14 = vsyncpa [#allocation5], 0 }
   0x5   :  { %16 = vsyncpa [#allocation5 + $0x1], 0  ;;  %s2528_s20 = smov 0   ;;  %s2530_s21 = smov 0  }
   0x6   :  { %s2532_s22 = smov 0   ;;  %s2534_s23 = smov 0  }
   0x7 LB: > { %s2549_s4 = sadd.s32 4294967295, %s2393_s23   ;;  %s2062_s24 = sadd.s32 4294967294, %s2393_s23   ;;  %s2393_s23 = sphi %s2534_s23, %s3637_s23   ;;  %s2389_s22 = sphi %s2532_s22, %s3636_s22   ;;  %s2385_s21 = sphi %s2530_s21, %s3635_s21   ;;  %s2381_s20 = sphi %s2528_s20, %s3634_s20  }
   0x8   : > { %s2553_s25 = sadd.s32 1, %s2393_s23   ;;  %s29_s26 = sadd.s32 1, %s2389_s22 }
   0x9   : > { %s26_s27 = ssub.s32 %s2393_s23, %s2553_s25  ;;  %p36_p0 = scmp.ne.s32.totalorder %s2389_s22, %s2385_s21 }
   0xa   : > { %p27_p1 = scmp.eq.s32.totalorder %s26_s27, 0  ;;  %p37_p2 = scmp.eq.s32.totalorder %s2393_s23, 0 }
   0xb   : > { %p42_p3 = scmp.ne.s32.totalorder %s2385_s21, %s2381_s20  ;;  %p43_p4 = scmp.eq.s32.totalorder %s2549_s4, 0 }
   0xc   : > { %s2565_s28 = scalar_select %p27_p1, %s2389_s22, %s29_s26  }
   0xd   : > { %p2567_p5 = por %p37_p2, %p36_p0  ;;  %p2571_p6 = por %p43_p4, %p42_p3 }
   0xe   : > { %p150_p7 = scmp.eq.s32.totalorder %s2549_s4, 1  ;;  %p156_p8 = scmp.eq.s32.totalorder %s2062_s24, 1 }
   0xf   : > { %p2090_p10 = scmp.lt.s32.totalorder %s2393_s23, 2  ;;  %s188_s8 = sand.u32 1, %s2389_s22  }
  0x10   : > { %p2578_p11 = por %p150_p7, %p36_p0  ;;  %p2582_p12 = por %p156_p8, %p42_p3 }
  0x11   : > { %s2076_s9 = sshll.u32 %s2393_s23, 5  ;;  %s2065_s10 = sshll.u32 %s188_s8, 5 }
  0x12   : > { %s197_s13 = scalar_lea.hbm %s3552_s0, %s2076_s9  ;;  %s192_s15 = scalar_lea.vmem [#allocation3], %s2065_s10 }
  0x13   : > { %s198_s14 = sshll.u32 %s197_s13, 4  ;;  %s200_s16 = sshll.u32 %s192_s15, 4  ;;  %s199_s14 = int_to_ptr.hbm [resolvable:$true] %s198_s14  ;;  %s201_s16 = int_to_ptr.vmem [resolvable:$true] %s200_s16 }
  0x14   : > { %p2593_p13 = pnand %p2090_p10, %p2567_p5  ;;  %p2068_p0 = scmp.ge.s32.totalorder %s2393_s23, 1 }
  0x15   : > { %p208_p1 = scmp.lt.s32.totalorder %s2393_s23, 3  ;;  %s189_s18 = scalar_lea.sflag [#allocation4], %s188_s8 }
  0x16   : > { %s2297_s19 = sshra.s32 %s199_s14, 4  ;;  %p2301_p3 = pneg %p2593_p13  ;;  %s2298_s19 = int_to_ptr.hbm [resolvable:$true] %s2297_s19 }
  0x17   : > { %s2299_s24 = scalar_lea.hbm %s2298_s19, 32  ;;  %s2304_s29 = scalar_lea.hbm %s3552_s0, 64 }
  0x18   : > { %p2300_p2 = scmp.ne.s32.totalorder %s2298_s19, %s2299_s24  ;;  %p2305_p5 = scmp.lt.s32.totalorder %s2298_s19, %s3552_s0 }
  0x19   : > { %p2306_p8 = scmp.lt.s32.totalorder %s2304_s29, %s2299_s24 }
  0x1a   : > { %p2302_p4 = pnand %p2301_p3, %p2300_p2 }
  0x1b   : > { %p2307_p10 = por %p2306_p8, %p2305_p5 }
  0x1c   : > { %p2303_p7 = pneg %p2302_p4 }
  0x1e   : > { %p2308_p9 = pnand %p2307_p10, %p2303_p7 }
  0x20   : > { %2311 = shalt.err (!%p2308_p9)
}
  0x21   : > { %s2395_s8 = smov 256   ;;  %s2396_s11 = smov 16  }
  0x22   : > { %2085 = dma.hbm_to_vmem [thread:$0]  (!%p2593_p13), %s199_s14, 512, %s201_s16, %s189_s18, %s2395_s8, %s2395_s8, %s2396_s11  }
  0x23   : > { %p209_p2 = pnand %p2068_p0, %p208_p1 }
  0x25   : > { %212 = sbr.rel (%p209_p2) target bundleno = 1289 (0x509), region = 40 }
  0x2a   : > { %s2614_s12 = sand.u32 1, %s2385_s21  }
  0x2b   : > { %s3566_s13 = sshll.u32 %s2614_s12, 5  ;;  %s215_s15 = scalar_lea.sflag [#allocation4], %s2614_s12 }
  0x2c   : > { %s2620_s19 = scalar_lea.vmem [#allocation3], %s3566_s13 }
  0x2d   : > { %2372 = dma.done.wait (%p2571_p6), %s215_s15, 512  }
  0x2e   : > { %2374 = vsyncadd (%p2571_p6), %s215_s15, 4294966784  ;;  %v2627_v0 = vld [vmem:[%s2620_s19 + $0x10] sm:$0xff]  ;;  %v2630_v1 = vld [vmem:[%s2620_s19 + $0x18] sm:$0xff]  ;;  %vm268_vm0 = vcmask 130048   ;;  %v2397_v14 = vmov 0   ;;  %vm264_vm1 = vcmask 7168  }
  0x2f   : > { %v259_v2 = vadd.f32 %v2630_v1, %v2627_v0  ;;  %v2635_v3 = vld [vmem:[%s2620_s19] sm:$0xff]  ;;  %v2638_v4 = vld [vmem:[%s2620_s19 + $0x8] sm:$0xff]  ;;  %v253_v6 = vmax.f32 %v2627_v0, %v2630_v1  ;;  %2224 = vset.pattern.permute.xlu2 %v2397_v14  ;;  %2266 = vset.pattern.permute.xlu0 %v2397_v14  ;;  %v2398_v23 = vmov 1   ;;  %v2399_v35 = vmov 2   ;;  %s2428_s29 = smov 127   ;;  %s2440_s9 = smov 49  }
  0x30   : > { %v256_v5 = vadd.f32 %v2638_v4, %v2635_v3  ;;  %v250_v7 = vmax.f32 %v2635_v3, %v2638_v4  ;;  %v267_v8 = vld [vmem:[%s3553_s1] sm:$0xf]  ;;  %v2400_v37 = vmov 3   ;;  %v2401_v38 = vmov 4   ;;  %v433_v45 = vld [vmem:[%s3554_s2 + $0x8] sm:$0xff]  ;;  %s2441_s10 = smov 50  }
  0x31   : > { %260 = vadd.xlane.f32.xlu0 %v259_v2  ;;  %v270_v9 = vsel %vm268_vm0, %v267_v8, 0  ;;  %v2652_v11 = vld [vmem:[%s3555_s3] sm:$0x3]  ;;  %v2402_v39 = vmov 5   ;;  %vm434_vm2 = vcmask 31744   ;;  %v2403_v41 = vmov 6  }
  0x32   : > { %257 = vadd.xlane.f32.xlu1 %v256_v5  ;;  %v290_v10 = vand.u32 4294901760, %v270_v9  ;;  %794 = vperm.xlu2 %2224, %v2652_v11   ;;  %v432_v40 = vld [vmem:[%s3554_s2] sm:$0xff]  ;;  %v2404_v48 = vmov 7   ;;  %v439_v52 = vsel %vm434_vm2, %v433_v45, 0  ;;  %v2405_v63 = vmov 8   ;;  %s2442_s8 = smov 51  }
  0x33   : > { %v436_v43 = vsel %vm434_vm2, %v432_v40, 0  ;;  %v470_v57 = vand.u32 4294901760, %v439_v52  ;;  %vm441_vm3 = vcmask 1043456   ;;  %v2423_v45 = vmov 27   ;;  %s2443_s11 = smov 48   ;;  %s2444_s15 = smov 47  }
  0x34   : > { %v291_v12 = vsub.f32 %v270_v9, %v290_v10  ;;  %v462_v44 = vand.u32 4294901760, %v436_v43  ;;  %vm714_vm12 = vcmask 1040384   ;;  %s2445_s30 = smov 46   ;;  %s2446_s14 = smov 45  }
  0x35   : > { %v471_v62 = vsub.f32 %v439_v52, %v470_v57  ;;  %s2447_s16 = smov 126   ;;  %s2448_s17 = smov 35  }
  0x36   : > { %v292_v16 = vand.u32 4294901760, %v291_v12  ;;  %v463_v50 = vsub.f32 %v436_v43, %v462_v44  ;;  %s2449_s18 = smov 125   ;;  %s2450_s24 = smov 34  }
  0x37   : > { %s2451_s26 = smov 115   ;;  %s2452_s27 = smov 33  }
  0x38   : > { %v293_v18 = vsub.f32 %v291_v12, %v292_v16  ;;  %v464_v56 = vand.u32 4294901760, %v463_v50  ;;  %s3567_s13 = smov 97  }
  0x39   : > { %254 = vmax.xlane.f32.xlu0 %v253_v6 }
  0x3a   : > { %251 = vmax.xlane.f32.xlu1 %v250_v7  ;;  %2225 = vset.pattern.permute.xlu2 %v2398_v23  ;;  %v294_v27 = vand.u32 4294901760, %v293_v18  ;;  %v465_v61 = vsub.f32 %v463_v50, %v464_v56  ;;  %v472_v7 = vand.u32 4294901760, %v471_v62  ;;  %v2407_v18 = vmov 10  }
  0x3b   : > { %817 = vperm.xlu2 %2225, %v2652_v11   ;;  %v2410_v23 = vmov 13  }
  0x3c   : > { %v466_v6 = vand.u32 4294901760, %v465_v61 }
  0x43   : > { %2226 = vset.pattern.permute.xlu2 %v2399_v35 }
  0x44   : > { %840 = vperm.xlu2 %2226, %v2652_v11  }
  0x4c   : > { %2227 = vset.pattern.permute.xlu2 %v2400_v37 }
  0x4d   : > { %863 = vperm.xlu2 %2227, %v2652_v11  }
  0x55   : > { %2228 = vset.pattern.permute.xlu2 %v2401_v38  ;;  %v2418_v38 = vmov 20  }
  0x56   : > { %886 = vperm.xlu2 %2228, %v2652_v11  }
  0x5e   : > { %2229 = vset.pattern.permute.xlu2 %v2402_v39  ;;  %v2419_v39 = vmov 25  }
  0x5f   : > { %909 = vperm.xlu2 %2229, %v2652_v11  }
  0x67   : > { %2230 = vset.pattern.permute.xlu2 %v2403_v41  ;;  %v2420_v41 = vmov 21  }
  0x68   : > { %932 = vperm.xlu2 %2230, %v2652_v11  }
  0x70   : > { %2231 = vset.pattern.permute.xlu2 %v2404_v48 }
  0x71   : > { %955 = vperm.xlu2 %2231, %v2652_v11  }
  0x79   : > { %2232 = vset.pattern.permute.xlu2 %v2405_v63 }
  0x7a   : > { %978 = vperm.xlu2 %2232, %v2652_v11  }
  0xa4   : > { %v261_v13 = vpop.xlane.xlu0 %260 }
  0xa5   : > { %v258_v15 = vpop.xlane.xlu1 %257  ;;  %v263_v17 = vmul.f32 0.00390625, %v261_v13  ;;  %v2406_v13 = vmov 9  }
  0xa6   : > { %v262_v19 = vmul.f32 0.00390625, %v258_v15  ;;  %2233 = vset.pattern.permute.xlu2 %v2406_v13 }
  0xa7   : > { %1001 = vperm.xlu2 %2233, %v2652_v11  }
  0xac   : > { %v255_v20 = vpop.xlane.xlu0 %254 }
  0xad   : > { %v266_v21 = vsel %vm264_vm1, %v255_v20, %v263_v17  ;;  %v252_v22 = vpop.xlane.xlu1 %251  ;;  %v2408_v20 = vmov 11  }
  0xae   : > { %v286_v24 = vand.u32 4294901760, %v266_v21  ;;  %v265_v25 = vsel %vm264_vm1, %v252_v22, %v262_v19  ;;  %v2675_v19 = vpop.permute.xlu2 %794  ;;  %v2409_v22 = vmov 12  }
  0xaf   : > { %v288_v26 = vand.u32 4294901760, %v265_v25  ;;  %2234 = vset.pattern.permute.xlu2 %v2407_v18 }
  0xb0   : > { %v314_v28 = vsub.f32 %v266_v21, %v286_v24  ;;  %287 = vmatpush.msra.mxu0 %v286_v24  ;;  %371 = vmatpush.msra.mxu3 %v286_v24 }
  0xb1   : > { %v320_v29 = vsub.f32 %v265_v25, %v288_v26  ;;  %1024 = vperm.xlu2 %2234, %v2652_v11   ;;  %v2411_v25 = vmov 14  }
  0xb2   : > { %289 = vmatpush.msra.mxu0 %v288_v26  ;;  %346 = vmatpush.msra.mxu2 %v314_v28  ;;  %v315_v30 = vand.u32 4294901760, %v314_v28 }
  0xb3   : > { %373 = vmatpush.msra.mxu3 %v288_v26  ;;  %v321_v31 = vand.u32 4294901760, %v320_v29  ;;  %295 = vmatmul.f32.vlgmr.msra.gmra.mxu0 %v294_v27  ;;  %v2412_v27 = vmov 15  }
  0xb4   : > { %349 = vmatpush.msra.mxu2 %v320_v29  ;;  %398 = vmatpush.msrb.mxu0 %v315_v30  ;;  %v316_v32 = vsub.f32 %v314_v28, %v315_v30  ;;  %v2414_v30 = vmov 16  }
  0xb5   : > { %352 = vmatmul.f32.vlgmr.msra.gmra.mxu2 %v291_v12  ;;  %377 = vmatmul.f32.vlgmr.msra.gmra.mxu3 %v292_v16  ;;  %v322_v33 = vsub.f32 %v320_v29, %v321_v31  ;;  %v2413_v29 = vmov 24  }
  0xb6   : > { %402 = vmatpush.msrb.mxu0 %v321_v31  ;;  %v317_v34 = vand.u32 4294901760, %v316_v32  ;;  %v2678_v21 = vpop.permute.xlu2 %817  ;;  %2248 = vset.pattern.permute.xlu1 %v2413_v29  ;;  %v2415_v32 = vmov 17   ;;  %v2432_v29 = vmov 35  }
  0xb7   : > { %v323_v36 = vand.u32 4294901760, %v322_v33  ;;  %1339 = vperm.xlu1 %2248, %v2652_v11  }
  0xb8   : > { %318 = vmatpush.msra.mxu1 %v317_v34  ;;  %v2416_v34 = vmov 18  }
  0xb9   : > { %2235 = vset.pattern.permute.xlu2 %v2408_v20 }
  0xba   : > { %324 = vmatpush.msra.mxu1 %v323_v36  ;;  %1047 = vperm.xlu2 %2235, %v2652_v11   ;;  %v2417_v36 = vmov 19  }
  0xbb   : > { %326 = vmatmul.f32.vlgmr.msra.gmra.mxu1 %v290_v10  ;;  %404 = vmatmul.f32.vlgmr.msrb.gmra.mxu0 %v290_v10 }
  0xbc   : > { %423 = vmatpush.msrb.mxu1 %v286_v24 }
  0xbe   : > { %425 = vmatpush.msrb.mxu1 %v288_v26  ;;  %v2681_v24 = vpop.permute.xlu2 %840 }
  0xbf   : > { %2249 = vset.pattern.permute.xlu1 %v2419_v39  ;;  %v2435_v39 = vmov 38  }
  0xc0   : > { %1362 = vperm.xlu1 %2249, %v2652_v11  }
  0xc2   : > { %2236 = vset.pattern.permute.xlu2 %v2409_v22  ;;  %v2430_v22 = vmov 33  }
  0xc3   : > { %427 = vmatmul.f32.vlgmr.msrb.gmra.mxu1 %v290_v10  ;;  %v473_v10 = vsub.f32 %v471_v62, %v472_v7  ;;  %1070 = vperm.xlu2 %2236, %v2652_v11  }
  0xc5   : > { %v474_v16 = vand.u32 4294901760, %v473_v10 }
  0xc6   : > { %v2685_v26 = vpop.permute.xlu2 %863 }
  0xcb   : > { %2237 = vset.pattern.permute.xlu2 %v2410_v23 }
  0xcc   : > { %1093 = vperm.xlu2 %2237, %v2652_v11  }
  0xce   : > { %v2688_v28 = vpop.permute.xlu2 %886 }
  0xd4   : > { %2238 = vset.pattern.permute.xlu2 %v2411_v25  ;;  %v2431_v25 = vmov 34  }
  0xd5   : > { %1116 = vperm.xlu2 %2238, %v2652_v11  }
  0xd6   : > { %v2692_v31 = vpop.permute.xlu2 %909 }
  0xdd   : > { %2239 = vset.pattern.permute.xlu2 %v2412_v27 }
  0xde   : > { %1139 = vperm.xlu2 %2239, %v2652_v11   ;;  %v2695_v33 = vpop.permute.xlu2 %932 }
  0xe6   : > { %2240 = vset.pattern.permute.xlu2 %v2414_v30  ;;  %v2698_v35 = vpop.permute.xlu2 %955 }
  0xe7   : > { %1162 = vperm.xlu2 %2240, %v2652_v11  }
  0xee   : > { %v2701_v37 = vpop.permute.xlu2 %978 }
  0xef   : > { %2241 = vset.pattern.permute.xlu2 %v2415_v32  ;;  %v2433_v32 = vmov 36  }
  0xf0   : > { %1185 = vperm.xlu2 %2241, %v2652_v11  }
  0xf8   : > { %2242 = vset.pattern.permute.xlu2 %v2416_v34 }
  0xf9   : > { %1208 = vperm.xlu2 %2242, %v2652_v11  }
 0x101   : > { %2243 = vset.pattern.permute.xlu2 %v2417_v36  ;;  %v2705_v40 = vpop.permute.xlu2 %1001  ;;  %v2434_v36 = vmov 37  }
 0x102   : > { %1231 = vperm.xlu2 %2243, %v2652_v11  }
 0x10a   : > { %2244 = vset.pattern.permute.xlu2 %v2418_v38 }
 0x10b   : > { %1254 = vperm.xlu2 %2244, %v2652_v11   ;;  %v2709_v43 = vpop.permute.xlu2 %1024 }
 0x113   : > { %2245 = vset.pattern.permute.xlu2 %v2420_v41 }
 0x114   : > { %1277 = vperm.xlu2 %2245, %v2652_v11  }
 0x129   : > { %v2746_v41 = vpop.permute.xlu1 %1339 }
 0x130   : > { %v296_v42 = vpop.f32.mrf.mxu0 }
 0x138   : > { %v327_v46 = vpop.f32.mrf.mxu1  ;;  %v353_v47 = vpop.f32.mrf.mxu2 }
 0x139   : > { %v328_v49 = vadd.f32 %v327_v46, %v296_v42  ;;  %v378_v51 = vpop.f32.mrf.mxu3  ;;  %v405_v54 = vpop.f32.mrf.mxu0  ;;  %v2421_v42 = vmov 26   ;;  %v2424_v46 = vmov 28  }
 0x13a   : > { %2250 = vset.pattern.permute.xlu1 %v2421_v42 }
 0x13b   : > { %v354_v53 = vadd.f32 %v353_v47, %v328_v49  ;;  %1385 = vperm.xlu1 %2250, %v2652_v11   ;;  %v2713_v47 = vpop.permute.xlu2 %1047  ;;  %v2425_v49 = vmov 29  }
 0x13d   : > { %v379_v55 = vadd.f32 %v378_v51, %v354_v53 }
 0x13f   : > { %v406_v58 = vadd.f32 %v405_v54, %v379_v55  ;;  %v2426_v55 = vmov 30  }
 0x140   : > { %v428_v59 = vpop.f32.mrf.mxu1 }
 0x141   : > { %v429_v60 = vadd.f32 %v428_v59, %v406_v58 }
 0x143   : > { %v431_v2 = vmax.f32 %v429_v60, 0.0  ;;  %2251 = vset.pattern.permute.xlu1 %v2423_v45  ;;  %v2751_v45 = vpop.permute.xlu1 %1362 }
 0x144   : > { %1408 = vperm.xlu1 %2251, %v2652_v11  }
 0x145   : > { %v443_v5 = vsel %vm441_vm3, %v431_v2, 0 }
 0x146   : > { %v460_v8 = vand.u32 4294901760, %v443_v5 }
 0x148   : > { %v495_v9 = vsub.f32 %v443_v5, %v460_v8  ;;  %461 = vmatpush.msrb.mxu2 %v460_v8  ;;  %554 = vmatpush.msra.mxu1 %v460_v8  ;;  %v2427_v5 = vmov 31  }
 0x149   : > { %467 = vmatmul.f32.vlgmr.msrb.gmra.mxu2 %v466_v6  ;;  %558 = vmatmul.f32.vlgmr.msra.gmra.mxu1 %v464_v56 }
 0x14a   : > { %526 = vmatpush.msra.mxu0 %v495_v9  ;;  %v496_v12 = vand.u32 4294901760, %v495_v9 }
 0x14b   : > { %529 = vmatmul.f32.vlgmr.msra.gmra.mxu0 %v463_v50  ;;  %v2717_v50 = vpop.permute.xlu2 %1070 }
 0x14c   : > { %586 = vmatpush.msra.mxu2 %v496_v12  ;;  %v497_v15 = vsub.f32 %v495_v9, %v496_v12  ;;  %2252 = vset.pattern.permute.xlu1 %v2424_v46 }
 0x14d   : > { %1431 = vperm.xlu1 %2252, %v2652_v11  }
 0x14e   : > { %v498_v17 = vand.u32 4294901760, %v497_v15 }
 0x150   : > { %499 = vmatpush.msrb.mxu3 %v498_v17  ;;  %v2429_v17 = vmov 32  }
 0x151   : > { %501 = vmatmul.f32.vlgmr.msrb.gmra.mxu3 %v462_v44  ;;  %475 = vmatmul.f32.gmra.mxu2 %v474_v16 }
 0x152   : > { %612 = vmatpush.msra.mxu3 %v460_v8  ;;  %564 = vmatmul.f32.gmra.mxu1 %v472_v7 }
 0x153   : > { %534 = vmatmul.f32.gmra.mxu0 %v471_v62  ;;  %v2720_v59 = vpop.permute.xlu2 %1093 }
 0x155   : > { %2253 = vset.pattern.permute.xlu1 %v2425_v49 }
 0x156   : > { %1454 = vperm.xlu1 %2253, %v2652_v11  }
 0x159   : > { %505 = vmatmul.f32.gmra.mxu3 %v470_v57  ;;  %588 = vmatmul.f32.vlgmr.msra.gmra.mxu2 %v462_v44 }
 0x15b   : > { %v2724_v10 = vpop.permute.xlu2 %1116 }
 0x15e   : > { %2254 = vset.pattern.permute.xlu1 %v2426_v55 }
 0x15f   : > { %1477 = vperm.xlu1 %2254, %v2652_v11  }
 0x161   : > { %614 = vmatmul.f32.vlgmr.msra.gmra.mxu3 %v462_v44  ;;  %592 = vmatmul.f32.gmra.mxu2 %v470_v57  ;;  %v2422_v44 = vmov 22  }
 0x162   : > { %2246 = vset.pattern.permute.xlu2 %v2422_v44  ;;  %v2436_v44 = vmov 39  }
 0x163   : > { %1300 = vperm.xlu2 %2246, %v2652_v11   ;;  %v2728_v20 = vpop.permute.xlu2 %1139 }
 0x167   : > { %2255 = vset.pattern.permute.xlu1 %v2427_v5 }
 0x168   : > { %1500 = vperm.xlu1 %2255, %v2652_v11  }
 0x169   : > { %618 = vmatmul.f32.gmra.mxu3 %v470_v57 }
 0x16b   : > { %v2731_v23 = vpop.permute.xlu2 %1162 }
 0x170   : > { %2256 = vset.pattern.permute.xlu1 %v2429_v17 }
 0x171   : > { %1523 = vperm.xlu1 %2256, %v2652_v11  }
 0x173   : > { %v2734_v27 = vpop.permute.xlu2 %1185 }
 0x179   : > { %2257 = vset.pattern.permute.xlu1 %v2430_v22 }
 0x17a   : > { %1546 = vperm.xlu1 %2257, %v2652_v11  }
 0x17b   : > { %v2737_v30 = vpop.permute.xlu2 %1208 }
 0x182   : > { %2258 = vset.pattern.permute.xlu1 %v2431_v25 }
 0x183   : > { %1569 = vperm.xlu1 %2258, %v2652_v11   ;;  %v2740_v34 = vpop.permute.xlu2 %1231 }
 0x18b   : > { %2259 = vset.pattern.permute.xlu1 %v2432_v29  ;;  %v2743_v38 = vpop.permute.xlu2 %1254 }
 0x18c   : > { %1592 = vperm.xlu1 %2259, %v2652_v11  }
 0x193   : > { %v2748_v42 = vpop.permute.xlu2 %1277 }
 0x194   : > { %2260 = vset.pattern.permute.xlu1 %v2433_v32 }
 0x195   : > { %1615 = vperm.xlu1 %2260, %v2652_v11  }
 0x19d   : > { %2261 = vset.pattern.permute.xlu1 %v2434_v36 }
 0x19e   : > { %1638 = vperm.xlu1 %2261, %v2652_v11  }
 0x1a6   : > { %2262 = vset.pattern.permute.xlu1 %v2435_v39 }
 0x1a7   : > { %1661 = vperm.xlu1 %2262, %v2652_v11  }
 0x1ad   : > { %v2756_v49 = vpop.permute.xlu1 %1385 }
 0x1af   : > { %2263 = vset.pattern.permute.xlu1 %v2436_v44 }
 0x1b0   : > { %1684 = vperm.xlu1 %2263, %v2652_v11  }
 0x1bd   : > { %v2753_v46 = vpop.permute.xlu2 %1300 }
 0x1c6   : > { %v559_v57 = vpop.f32.mrf.mxu1 }
 0x1c8   : > { %v530_v53 = vpop.f32.mrf.mxu0 }
 0x1cc   : > { %v468_v48 = vpop.f32.mrf.mxu2 }
 0x1cf   : > { %v565_v9 = vpop.f32.mrf.mxu1 }
 0x1d0   : > { %v535_v63 = vpop.f32.mrf.mxu0 }
 0x1d4   : > { %v502_v51 = vpop.f32.mrf.mxu3  ;;  %v476_v52 = vpop.f32.mrf.mxu2 }
 0x1d5   : > { %v503_v54 = vadd.f32 %v502_v51, %v468_v48  ;;  %v2437_v48 = vmov 40  }
 0x1d6   : > { %2264 = vset.pattern.permute.xlu1 %v2437_v48 }
 0x1d7   : > { %v531_v58 = vadd.f32 %v530_v53, %v503_v54  ;;  %1707 = vperm.xlu1 %2264, %v2652_v11  }
 0x1d9   : > { %v560_v62 = vadd.f32 %v559_v57, %v531_v58 }
 0x1dc   : > { %v506_v56 = vpop.f32.mrf.mxu3  ;;  %v589_v60 = vpop.f32.mrf.mxu2 }
 0x1dd   : > { %v507_v61 = vadd.f32 %v506_v56, %v476_v52  ;;  %v590_v2 = vadd.f32 %v589_v60, %v560_v62  ;;  %v2438_v52 = vmov 41   ;;  %v2759_v56 = vpop.permute.xlu1 %1408 }
 0x1df   : > { %v536_v7 = vadd.f32 %v535_v63, %v507_v61  ;;  %2265 = vset.pattern.permute.xlu1 %v2438_v52 }
 0x1e0   : > { %1730 = vperm.xlu1 %2265, %v2652_v11  }
 0x1e1   : > { %v566_v13 = vadd.f32 %v565_v9, %v536_v7 }
 0x1e4   : > { %v615_v6 = vpop.f32.mrf.mxu3  ;;  %v593_v12 = vpop.f32.mrf.mxu2 }
 0x1e5   : > { %v616_v8 = vadd.f32 %v615_v6, %v590_v2  ;;  %v594_v15 = vadd.f32 %v593_v12, %v566_v13  ;;  %v2762_v2 = vpop.permute.xlu1 %1431 }
 0x1e7   : > { %624 = vrot.lane.b32.xlu2 %v616_v8, %s2428_s29 }
 0x1e8   : > { %2267 = vset.pattern.permute.xlu1 %v2397_v14 }
 0x1ec   : > { %v619_v16 = vpop.f32.mrf.mxu3 }
 0x1ed   : > { %v620_v18 = vadd.f32 %v619_v16, %v594_v15  ;;  %v2764_v12 = vpop.permute.xlu1 %1454 }
 0x1ef   : > { %626 = vrot.lane.b32.xlu2 %v620_v18, %s2428_s29 }
 0x1f5   : > { %v2766_v48 = vpop.permute.xlu1 %1477 }
 0x241   : > { %v625_v51 = vpop.permute.xlu2 %624 }
 0x242   : > { %v630_v53 = vadd.f32 %v625_v51, %v616_v8 }
 0x244   : > { %v632_v54 = vsub.f32 0.0, %v630_v53 }
 0x246   : > { %v634_v55 = vmul.f32 1.442695, %v632_v54 }
 0x248   : > { %2276 = vpow2.f32 %v634_v55  ;;  %v2768_v55 = vpop.permute.xlu1 %1500 }
 0x249   : > { %v627_v57 = vpop.permute.xlu2 %626 }
 0x24a   : > { %v631_v58 = vadd.f32 %v627_v57, %v620_v18 }
 0x24c   : > { %v633_v60 = vsub.f32 0.0, %v631_v58 }
 0x24e   : > { %v2277_v61 = vpop.eup %2276  ;;  %v636_v62 = vmul.f32 1.442695, %v633_v60 }
 0x24f   : > { %v638_v63 = vadd.f32 1.0, %v2277_v61 }
 0x250   : > { %2278 = vpow2.f32 %v636_v62  ;;  %v2770_v57 = vpop.permute.xlu1 %1523 }
 0x251   : > { %2280 = vrcp.f32 %v638_v63  ;;  %v651_v13 = vand.u32 2147483648, %v638_v63  ;;  %v649_v14 = vand.u32 2147483647, %v638_v63  ;;  %vm645_vm5 = vweird.f32 %v638_v63 }
 0x253   : > { %v652_v18 = vor.u32 1.1754944e-38, %v651_v13  ;;  %vm650_vm7 = vcmp.eq.f32.partialorder %v649_v14, 8.507059e+37 }
 0x256   : > { %v2279_v5 = vpop.eup %2278 }
 0x257   : > { %v2281_v6 = vpop.eup %2280  ;;  %v639_v7 = vadd.f32 1.0, %v2279_v5 }
 0x258   : > { %v641_v8 = vmul.f32 %v2281_v6, %v638_v63  ;;  %vm646_vm4 = vweird.f32 %v2281_v6  ;;  %v2772_v58 = vpop.permute.xlu1 %1546 }
 0x259   : > { %2282 = vrcp.f32 %v639_v7  ;;  %vm647_vm6 = vmor %vm645_vm5, %vm646_vm4  ;;  %v666_v36 = vand.u32 2147483648, %v639_v7  ;;  %v664_v44 = vand.u32 2147483647, %v639_v7  ;;  %vm660_vm9 = vweird.f32 %v639_v7 }
 0x25a   : > { %v642_v9 = vsub.f32 1.0, %v641_v8  ;;  %v2439_v8 = vmov 23  }
 0x25b   : > { %v667_v52 = vor.u32 1.1754944e-38, %v666_v36  ;;  %vm665_vm11 = vcmp.eq.f32.partialorder %v664_v44, 8.507059e+37  ;;  %2247 = vset.pattern.permute.xlu2 %v2439_v8 }
 0x25c   : > { %v643_v15 = vmul.f32 %v2281_v6, %v642_v9  ;;  %1323 = vperm.xlu2 %2247, %v2652_v11  }
 0x25e   : > { %v644_v16 = vadd.f32 %v2281_v6, %v643_v15 }
 0x25f   : > { %v2283_v17 = vpop.eup %2282 }
 0x260   : > { %v648_v22 = vsel %vm647_vm6, %v2281_v6, %v644_v16  ;;  %v656_v25 = vmul.f32 %v2283_v17, %v639_v7  ;;  %vm661_vm8 = vweird.f32 %v2283_v17  ;;  %v2774_v60 = vpop.permute.xlu1 %1569 }
 0x261   : > { %v653_v29 = vsel %vm650_vm7, %v652_v18, %v648_v22  ;;  %vm662_vm10 = vmor %vm660_vm9, %vm661_vm8 }
 0x262   : > { %672 = vperm.xlu0 %2266, %v653_v29   ;;  %v657_v32 = vsub.f32 1.0, %v656_v25 }
 0x264   : > { %v658_v39 = vmul.f32 %v2283_v17, %v657_v32 }
 0x266   : > { %v659_v51 = vadd.f32 %v2283_v17, %v658_v39 }
 0x268   : > { %v663_v53 = vsel %vm662_vm10, %v2283_v17, %v659_v51  ;;  %v2776_v61 = vpop.permute.xlu1 %1592 }
 0x269   : > { %v668_v54 = vsel %vm665_vm11, %v667_v52, %v663_v53 }
 0x26a   : > { %677 = vperm.xlu1 %2267, %v668_v54  }
 0x270   : > { %v2778_v62 = vpop.permute.xlu1 %1615 }
 0x278   : > { %v2780_v63 = vpop.permute.xlu1 %1638 }
 0x280   : > { %v2782_v5 = vpop.permute.xlu1 %1661 }
 0x281   : > { %3583 = vst [vmem:[#allocation9_spill] sm:$0xff] %v2782_v5 }
 0x288   : > { %v2784_v6 = vpop.permute.xlu1 %1684 }
 0x289   : > { %3584 = vst [vmem:[#allocation10_spill] sm:$0xff] %v2784_v6 }
 0x290   : > { %v2786_v7 = vpop.permute.xlu1 %1707 }
 0x291   : > { %3585 = vst [vmem:[#allocation11_spill] sm:$0xff] %v2786_v7 }
 0x298   : > { %v2789_v9 = vpop.permute.xlu1 %1730 }
 0x299   : > { %3586 = vst [vmem:[#allocation12_spill] sm:$0xff] %v2789_v9 }
 0x2d4   : > { %v673_v13 = vpop.permute.xlu0 %672 }
 0x2d5   : > { %v2792_v14 = vmul.f32 %v673_v13, %v2635_v3  ;;  %v2795_v16 = vmul.f32 %v673_v13, %v2638_v4 }
 0x2d7   : > { %3587 = vst [vmem:[#allocation13_spill] sm:$0xff] %v2792_v14 }
 0x2d8   : > { %3588 = vst [vmem:[#allocation14_spill] sm:$0xff] %v2795_v16 }
 0x2dc   : > { %v678_v15 = vpop.permute.xlu1 %677 }
 0x2dd   : > { %v2798_v17 = vmul.f32 %v678_v15, %v2627_v0  ;;  %v2801_v18 = vmul.f32 %v678_v15, %v2630_v1 }
 0x2df   : > { %3589 = vst [vmem:[#allocation15_spill] sm:$0xff] %v2798_v17  ;;  %v684_v22 = vmax.f32 %v2792_v14, %v2798_v17  ;;  %v691_v11 = vmax.f32 %v2795_v16, %v2801_v18  ;;  %v698_v25 = vadd.f32 %v2798_v17, %v2792_v14  ;;  %v705_v3 = vadd.f32 %v2801_v18, %v2795_v16 }
 0x2e0   : > { %3590 = vst [vmem:[#allocation16_spill] sm:$0xff] %v2801_v18 }
 0x2e1   : > { %v685_v4 = vrot.slane %v684_v22, 4  ;;  %v692_v29 = vrot.slane %v691_v11, 4  ;;  %v699_v32 = vrot.slane %v698_v25, 4  ;;  %v706_v0 = vrot.slane %v705_v3, 4 }
 0x2e3   : > { %v686_v36 = vmax.f32 %v684_v22, %v685_v4  ;;  %v693_v39 = vmax.f32 %v691_v11, %v692_v29  ;;  %v700_v1 = vadd.f32 %v699_v32, %v698_v25  ;;  %v707_v44 = vadd.f32 %v706_v0, %v705_v3 }
 0x2e5   : > { %v687_v51 = vrot.slane %v686_v36, 2  ;;  %v694_v52 = vrot.slane %v693_v39, 2  ;;  %v701_v53 = vrot.slane %v700_v1, 2  ;;  %v708_v54 = vrot.slane %v707_v44, 2 }
 0x2e7   : > { %v688_v8 = vmax.f32 %v686_v36, %v687_v51  ;;  %v695_v13 = vmax.f32 %v693_v39, %v694_v52  ;;  %v702_v15 = vadd.f32 %v701_v53, %v700_v1  ;;  %v709_v9 = vadd.f32 %v708_v54, %v707_v44 }
 0x2e9   : > { %v689_v17 = vrot.slane %v688_v8, 1  ;;  %v696_v14 = vrot.slane %v695_v13, 1  ;;  %v703_v7 = vrot.slane %v702_v15, 1  ;;  %v710_v18 = vrot.slane %v709_v9, 1 }
 0x2eb   : > { %v704_v16 = vadd.f32 %v703_v7, %v702_v15  ;;  %v711_v6 = vadd.f32 %v710_v18, %v709_v9  ;;  %v690_v5 = vmax.f32 %v688_v8, %v689_v17  ;;  %v697_v22 = vmax.f32 %v695_v13, %v696_v14 }
 0x2ed   : > { %v712_v11 = vmul.f32 0.0625, %v704_v16  ;;  %v713_v25 = vmul.f32 0.0625, %v711_v6  ;;  %v717_v6 = vlaneseq }
 0x2ef   : > { %v2811_v3 = vsel %vm714_vm12, %v690_v5, %v712_v11  ;;  %v2813_v4 = vsel %vm714_vm12, %v697_v22, %v713_v25  ;;  %v2856_v5 = vpop.permute.xlu2 %1323  ;;  %v2862_v9 = vand.u32 127, %v717_v6 }
 0x2f0   : > { %832 = vrot.lane.b32.xlu0 %v2813_v4, %s2440_s9  ;;  %809 = vrot.lane.b32.xlu1 %v2813_v4, %s2441_s10 }
 0x2f1   : > { %783 = vrot.lane.b32.xlu2 %v2811_v3, %s2442_s8  ;;  %vm787_vm13 = vcmp.lt.s32.totalorder %v2862_v9, 51  ;;  %v2874_v18 = vadd.s32 128, %v2862_v9  ;;  %v2877_v29 = vand.u32 15, %v2862_v9  ;;  %vm722_vm14 = vcmp.ge.s32.totalorder %v2862_v9, 48 }
 0x2f2   : > { %vm811_vm1 = vcmp.lt.s32.totalorder %v2862_v9, 50  ;;  %vm834_vm7 = vcmp.lt.s32.totalorder %v2862_v9, 49  ;;  %vm857_vm10 = vcmp.lt.s32.totalorder %v2862_v9, 48  ;;  %vm880_vm12 = vcmp.lt.s32.totalorder %v2862_v9, 47 }
 0x2f3   : > { %v2880_v32 = vand.u32 15, %v2874_v18  ;;  %vm752_vm15 = vcmp.ge.s32.totalorder %v2877_v29, 3  ;;  %vm758_vm0 = vcmp.ge.s32.totalorder %v2877_v29, 2  ;;  %vm3575_vm6 = vcmp.ge.s32.totalorder %v2877_v29, 1 }
 0x2f4   : > { %vm2894_vm2 = vmand %vm722_vm14, %vm752_vm15  ;;  %vm3577_vm11 = vcmp.lt.s32.totalorder %v2877_v29, 15 }
 0x2f5   : > { %vm753_vm3 = vcmp.ge.s32.totalorder %v2880_v32, 3  ;;  %vm759_vm4 = vcmp.ge.s32.totalorder %v2880_v32, 2  ;;  %vm814_vm5 = vmand %vm722_vm14, %vm758_vm0  ;;  %vm763_vm8 = vcmp.ge.s32.totalorder %v2880_v32, 1 }
 0x2f6   : > { %vm837_vm9 = vmand %vm722_vm14, %vm3575_vm6 }
 0x2f8   : > { %855 = vrot.lane.b32.xlu0 %v2813_v4, %s2443_s11  ;;  %830 = vrot.lane.b32.xlu1 %v2811_v3, %s2440_s9  ;;  %s2453_s9 = smov 114  }
 0x2f9   : > { %785 = vrot.lane.b32.xlu2 %v2813_v4, %s2442_s8  ;;  %s2455_s8 = smov 113  }
 0x300   : > { %878 = vrot.lane.b32.xlu0 %v2813_v4, %s2444_s15  ;;  %853 = vrot.lane.b32.xlu1 %v2811_v3, %s2443_s11  ;;  %s2456_s11 = smov 31  }
 0x301   : > { %807 = vrot.lane.b32.xlu2 %v2811_v3, %s2441_s10  ;;  %s2454_s10 = smov 32  }
 0x308   : > { %901 = vrot.lane.b32.xlu0 %v2813_v4, %s2445_s30  ;;  %876 = vrot.lane.b32.xlu1 %v2811_v3, %s2444_s15  ;;  %s2457_s15 = smov 112  }
 0x309   : > { %1354 = vrot.lane.b32.xlu2 %v2813_v4, %s2428_s29 }
 0x310   : > { %924 = vrot.lane.b32.xlu0 %v2813_v4, %s2446_s14  ;;  %899 = vrot.lane.b32.xlu1 %v2811_v3, %s2445_s30  ;;  %s2458_s30 = smov 30  }
 0x311   : > { %1377 = vrot.lane.b32.xlu2 %v2813_v4, %s2447_s16 }
 0x318   : > { %947 = vrot.lane.b32.xlu0 %v2813_v4, %s2448_s17  ;;  %922 = vrot.lane.b32.xlu1 %v2811_v3, %s2446_s14  ;;  %s2459_s14 = smov 111  }
 0x319   : > { %1400 = vrot.lane.b32.xlu2 %v2813_v4, %s2449_s18 }
 0x320   : > { %970 = vrot.lane.b32.xlu0 %v2813_v4, %s2450_s24  ;;  %945 = vrot.lane.b32.xlu1 %v2811_v3, %s2448_s17  ;;  %s2460_s17 = smov 29  }
 0x321   : > { %1423 = vrot.lane.b32.xlu2 %v2813_v4, %s2451_s26 }
 0x328   : > { %993 = vrot.lane.b32.xlu0 %v2813_v4, %s2452_s27  ;;  %968 = vrot.lane.b32.xlu1 %v2811_v3, %s2450_s24  ;;  %s2461_s24 = smov 110  }
 0x329   : > { %1446 = vrot.lane.b32.xlu2 %v2813_v4, %s2453_s9 }
 0x330   : > { %1016 = vrot.lane.b32.xlu0 %v2813_v4, %s2454_s10  ;;  %991 = vrot.lane.b32.xlu1 %v2811_v3, %s2452_s27  ;;  %s2462_s27 = smov 19  }
 0x331   : > { %1469 = vrot.lane.b32.xlu2 %v2813_v4, %s2455_s8 }
 0x338   : > { %1039 = vrot.lane.b32.xlu0 %v2813_v4, %s2456_s11  ;;  %1014 = vrot.lane.b32.xlu1 %v2811_v3, %s2454_s10  ;;  %s2463_s10 = smov 109  }
 0x339   : > { %1492 = vrot.lane.b32.xlu2 %v2813_v4, %s2457_s15 }
 0x340   : > { %1062 = vrot.lane.b32.xlu0 %v2813_v4, %s2458_s30  ;;  %1037 = vrot.lane.b32.xlu1 %v2811_v3, %s2456_s11  ;;  %s2464_s11 = smov 18  }
 0x341   : > { %1515 = vrot.lane.b32.xlu2 %v2813_v4, %s2459_s14 }
 0x348   : > { %1085 = vrot.lane.b32.xlu0 %v2813_v4, %s2460_s17  ;;  %1060 = vrot.lane.b32.xlu1 %v2811_v3, %s2458_s30  ;;  %s2465_s30 = smov 99  }
 0x349   : > { %1538 = vrot.lane.b32.xlu2 %v2813_v4, %s2461_s24 }
 0x34b   : > { %v784_v7 = vpop.permute.xlu2 %783 }
 0x350   : > { %1108 = vrot.lane.b32.xlu0 %v2813_v4, %s2462_s27  ;;  %1083 = vrot.lane.b32.xlu1 %v2811_v3, %s2460_s17  ;;  %s2466_s17 = smov 17  }
 0x351   : > { %1561 = vrot.lane.b32.xlu2 %v2813_v4, %s2463_s10 }
 0x353   : > { %v786_v14 = vpop.permute.xlu2 %785 }
 0x354   : > { %v788_v16 = vsel %vm787_vm13, %v784_v7, %v786_v14  ;;  %v789_v17 = vsel %vm787_vm13, %v786_v14, %v784_v7  ;;  %vm3576_vm13 = vcmp.lt.s32.totalorder %v2880_v32, 15 }
 0x355   : > { %v797_v39 = vmul.f32 %v2675_v19, %v789_v17  ;;  %v798_v1 = vmul.f32 %v2675_v19, %v788_v16 }
 0x357   : > { %v803_v19 = vsel %vm2894_vm2, %v797_v39, 0.0  ;;  %v804_v13 = vsel %vm753_vm3, %v798_v1, 0.0  ;;  %vm774_vm2 = vcmp.lt.s32.totalorder %v2877_v29, 14 }
 0x358   : > { %1131 = vrot.lane.b32.xlu0 %v2813_v4, %s2464_s11  ;;  %1106 = vrot.lane.b32.xlu1 %v2811_v3, %s2462_s27  ;;  %s2467_s27 = smov 98  }
 0x359   : > { %1584 = vrot.lane.b32.xlu2 %v2813_v4, %s2465_s30 }
 0x35b   : > { %v808_v0 = vpop.permute.xlu2 %807 }
 0x360   : > { %1154 = vrot.lane.b32.xlu0 %v2813_v4, %s2466_s17  ;;  %1129 = vrot.lane.b32.xlu1 %v2811_v3, %s2464_s11  ;;  %s3568_s11 = smov 16  }
 0x361   : > { %1607 = vrot.lane.b32.xlu2 %v2813_v4, %s2467_s27 }
 0x362   : > { %v833_v44 = vpop.permute.xlu0 %832  ;;  %v810_v51 = vpop.permute.xlu1 %809 }
 0x363   : > { %v812_v52 = vsel %vm811_vm1, %v808_v0, %v810_v51  ;;  %v813_v53 = vsel %vm811_vm1, %v810_v51, %v808_v0  ;;  %vm883_vm1 = vmand %vm722_vm14, %vm3577_vm11 }
 0x364   : > { %v820_v54 = vmul.f32 %v2678_v21, %v813_v53  ;;  %v821_v8 = vmul.f32 %v2678_v21, %v812_v52 }
 0x366   : > { %v826_v15 = vsel %vm814_vm5, %v820_v54, 0.0  ;;  %v827_v22 = vsel %vm759_vm4, %v821_v8, 0.0  ;;  %vm903_vm5 = vcmp.lt.s32.totalorder %v2862_v9, 46 }
 0x367   : > { %v828_v11 = vadd.f32 %v826_v15, %v803_v19  ;;  %v829_v25 = vadd.f32 %v827_v22, %v804_v13 }
 0x368   : > { %1177 = vrot.lane.b32.xlu0 %v2813_v4, %s3568_s11  ;;  %1152 = vrot.lane.b32.xlu1 %v2811_v3, %s2466_s17  ;;  %s2470_s17 = smov 15  }
 0x369   : > { %1630 = vrot.lane.b32.xlu2 %v2813_v4, %s3567_s13  ;;  %s3569_s13 = smov 96  }
 0x36a   : > { %v856_v21 = vpop.permute.xlu0 %855  ;;  %v831_v6 = vpop.permute.xlu1 %830 }
 0x36b   : > { %v835_v7 = vsel %vm834_vm7, %v831_v6, %v833_v44  ;;  %v836_v14 = vsel %vm834_vm7, %v833_v44, %v831_v6  ;;  %vm3574_vm7 = vcmp.lt.s32.totalorder %v2880_v32, 14 }
 0x36c   : > { %v843_v16 = vmul.f32 %v2681_v24, %v836_v14  ;;  %v844_v17 = vmul.f32 %v2681_v24, %v835_v7 }
 0x36e   : > { %v849_v0 = vsel %vm837_vm9, %v843_v16, 0.0  ;;  %v850_v36 = vsel %vm763_vm8, %v844_v17, 0.0  ;;  %vm906_vm9 = vmand %vm722_vm14, %vm774_vm2 }
 0x36f   : > { %v851_v39 = vadd.f32 %v849_v0, %v828_v11  ;;  %v852_v1 = vadd.f32 %v850_v36, %v829_v25 }
 0x370   : > { %1200 = vrot.lane.b32.xlu0 %v2813_v4, %s2470_s17  ;;  %1175 = vrot.lane.b32.xlu1 %v2811_v3, %s3568_s11  ;;  %s2472_s11 = smov 14  }
 0x371   : > { %1653 = vrot.lane.b32.xlu2 %v2813_v4, %s3569_s13  ;;  %s3570_s13 = smov 95  }
 0x372   : > { %v879_v44 = vpop.permute.xlu0 %878  ;;  %v854_v24 = vpop.permute.xlu1 %853 }
 0x373   : > { %v858_v51 = vsel %vm857_vm10, %v854_v24, %v856_v21  ;;  %v859_v52 = vsel %vm857_vm10, %v856_v21, %v854_v24  ;;  %vm778_vm10 = vcmp.lt.s32.totalorder %v2877_v29, 13 }
 0x374   : > { %v866_v53 = vmul.f32 %v2685_v26, %v859_v52  ;;  %v867_v54 = vmul.f32 %v2685_v26, %v858_v51 }
 0x376   : > { %v872_v8 = vsel %vm722_vm14, %v866_v53, 0.0  ;;  %v875_v19 = vadd.f32 %v867_v54, %v852_v1 }
 0x377   : > { %v874_v13 = vadd.f32 %v872_v8, %v851_v39 }
 0x378   : > { %1223 = vrot.lane.b32.xlu0 %v2813_v4, %s2472_s11  ;;  %1198 = vrot.lane.b32.xlu1 %v2811_v3, %s2470_s17  ;;  %s2474_s17 = smov 13  }
 0x379   : > { %1676 = vrot.lane.b32.xlu2 %v2813_v4, %s3570_s13  ;;  %s3571_s13 = smov 94  }
 0x37a   : > { %v902_v15 = vpop.permute.xlu0 %901  ;;  %v877_v26 = vpop.permute.xlu1 %876 }
 0x37b   : > { %v881_v22 = vsel %vm880_vm12, %v877_v26, %v879_v44  ;;  %v882_v11 = vsel %vm880_vm12, %v879_v44, %v877_v26  ;;  %vm926_vm12 = vcmp.lt.s32.totalorder %v2862_v9, 45 }
 0x37c   : > { %v889_v25 = vmul.f32 %v2688_v28, %v882_v11  ;;  %v890_v21 = vmul.f32 %v2688_v28, %v881_v22 }
 0x37e   : > { %v895_v6 = vsel %vm883_vm1, %v889_v25, 0.0  ;;  %v896_v7 = vsel %vm3576_vm13, %v890_v21, 0.0  ;;  %vm779_vm1 = vcmp.lt.s32.totalorder %v2880_v32, 13 }
 0x37f   : > { %v897_v14 = vadd.f32 %v895_v6, %v874_v13  ;;  %v898_v16 = vadd.f32 %v896_v7, %v875_v19 }
 0x380   : > { %1246 = vrot.lane.b32.xlu0 %v2813_v4, %s2474_s17  ;;  %1221 = vrot.lane.b32.xlu1 %v2811_v3, %s2472_s11  ;;  %s2476_s11 = smov 3  }
 0x381   : > { %1699 = vrot.lane.b32.xlu2 %v2813_v4, %s3571_s13  ;;  %s3572_s13 = smov 93  }
 0x382   : > { %v925_v28 = vpop.permute.xlu0 %924  ;;  %v900_v17 = vpop.permute.xlu1 %899 }
 0x383   : > { %v904_v0 = vsel %vm903_vm5, %v900_v17, %v902_v15  ;;  %v905_v36 = vsel %vm903_vm5, %v902_v15, %v900_v17  ;;  %vm929_vm5 = vmand %vm722_vm14, %vm778_vm10  ;;  %vm949_vm14 = vcmp.lt.s32.totalorder %v2862_v9, 35 }
 0x384   : > { %v912_v39 = vmul.f32 %v2692_v31, %v905_v36  ;;  %v913_v1 = vmul.f32 %v2692_v31, %v904_v0 }
 0x386   : > { %v918_v44 = vsel %vm906_vm9, %v912_v39, 0.0  ;;  %v919_v24 = vsel %vm3574_vm7, %v913_v1, 0.0  ;;  %vm728_vm9 = vcmp.ge.s32.totalorder %v2862_v9, 32 }
 0x387   : > { %v920_v51 = vadd.f32 %v918_v44, %v897_v14  ;;  %v921_v52 = vadd.f32 %v919_v24, %v898_v16 }
 0x388   : > { %1269 = vrot.lane.b32.xlu0 %v2813_v4, %s2476_s11  ;;  %1244 = vrot.lane.b32.xlu1 %v2811_v3, %s2474_s17  ;;  %s2478_s17 = smov 2  }
 0x389   : > { %1722 = vrot.lane.b32.xlu2 %v2813_v4, %s3572_s13  ;;  %s3573_s13 = smov 83  }
 0x38a   : > { %v948_v31 = vpop.permute.xlu0 %947  ;;  %v923_v53 = vpop.permute.xlu1 %922 }
 0x38b   : > { %v927_v54 = vsel %vm926_vm12, %v923_v53, %v925_v28  ;;  %v928_v8 = vsel %vm926_vm12, %v925_v28, %v923_v53  ;;  %vm952_vm12 = vmand %vm728_vm9, %vm752_vm15 }
 0x38c   : > { %v935_v19 = vmul.f32 %v2695_v33, %v928_v8  ;;  %v936_v13 = vmul.f32 %v2695_v33, %v927_v54 }
 0x38e   : > { %v941_v15 = vsel %vm929_vm5, %v935_v19, 0.0  ;;  %v942_v26 = vsel %vm779_vm1, %v936_v13, 0.0  ;;  %vm972_vm5 = vcmp.lt.s32.totalorder %v2862_v9, 34 }
 0x38f   : > { %v943_v22 = vadd.f32 %v941_v15, %v920_v51  ;;  %v944_v11 = vadd.f32 %v942_v26, %v921_v52 }
 0x390   : > { %1292 = vrot.lane.b32.xlu0 %v2813_v4, %s2478_s17  ;;  %1267 = vrot.lane.b32.xlu1 %v2811_v3, %s2476_s11  ;;  %s2480_s11 = smov 1  }
 0x391   : > { %1745 = vrot.lane.b32.xlu2 %v2813_v4, %s3573_s13  ;;  %s2481_s13 = smov 82  }
 0x392   : > { %v971_v33 = vpop.permute.xlu0 %970  ;;  %v946_v25 = vpop.permute.xlu1 %945 }
 0x393   : > { %v950_v21 = vsel %vm949_vm14, %v946_v25, %v948_v31  ;;  %v951_v6 = vsel %vm949_vm14, %v948_v31, %v946_v25  ;;  %vm975_vm14 = vmand %vm728_vm9, %vm758_vm0 }
 0x394   : > { %v958_v7 = vmul.f32 %v2698_v35, %v951_v6  ;;  %v959_v14 = vmul.f32 %v2698_v35, %v950_v21 }
 0x396   : > { %v964_v16 = vsel %vm952_vm12, %v958_v7, 0.0  ;;  %v965_v28 = vsel %vm753_vm3, %v959_v14, 0.0  ;;  %vm995_vm12 = vcmp.lt.s32.totalorder %v2862_v9, 33 }
 0x397   : > { %v966_v17 = vadd.f32 %v964_v16, %v943_v22  ;;  %v967_v0 = vadd.f32 %v965_v28, %v944_v11 }
 0x398   : > { %1315 = vrot.lane.b32.xlu0 %v2813_v4, %s2480_s11  ;;  %1290 = vrot.lane.b32.xlu1 %v2811_v3, %s2478_s17  ;;  %s2482_s17 = smov 81  }
 0x399   : > { %1768 = vrot.lane.b32.xlu2 %v2813_v4, %s2481_s13 }
 0x39a   : > { %v994_v36 = vpop.permute.xlu0 %993  ;;  %v969_v39 = vpop.permute.xlu1 %968 }
 0x39b   : > { %v973_v35 = vsel %vm972_vm5, %v969_v39, %v971_v33  ;;  %v974_v1 = vsel %vm972_vm5, %v971_v33, %v969_v39  ;;  %vm998_vm5 = vmand %vm728_vm9, %vm3575_vm6 }
 0x39c   : > { %v981_v44 = vmul.f32 %v2701_v37, %v974_v1  ;;  %v982_v24 = vmul.f32 %v2701_v37, %v973_v35 }
 0x39e   : > { %v987_v51 = vsel %vm975_vm14, %v981_v44, 0.0  ;;  %v988_v52 = vsel %vm759_vm4, %v982_v24, 0.0  ;;  %vm1018_vm14 = vcmp.lt.s32.totalorder %v2862_v9, 32 }
 0x39f   : > { %v989_v31 = vadd.f32 %v987_v51, %v966_v17  ;;  %v990_v53 = vadd.f32 %v988_v52, %v967_v0 }
 0x3a0   : > { %1352 = vrot.lane.b32.xlu0 %v2811_v3, %s2428_s29  ;;  %1313 = vrot.lane.b32.xlu1 %v2811_v3, %s2480_s11  ;;  %s2483_s29 = smov 80   ;;  %s2077_s11 = sshll.u32 %s2549_s4, 5 }
 0x3a1   : > { %1791 = vrot.lane.b32.xlu2 %v2813_v4, %s2482_s17  ;;  %s1985_s4 = scalar_lea.hbm %s3557_s5, %s2077_s11 }
 0x3a2   : > { %v1017_v54 = vpop.permute.xlu0 %1016  ;;  %v992_v8 = vpop.permute.xlu1 %991 }
 0x3a3   : > { %v996_v37 = vsel %vm995_vm12, %v992_v8, %v994_v36  ;;  %v997_v19 = vsel %vm995_vm12, %v994_v36, %v992_v8  ;;  %vm1041_vm12 = vcmp.lt.s32.totalorder %v2862_v9, 31 }
 0x3a4   : > { %v1004_v13 = vmul.f32 %v2705_v40, %v997_v19  ;;  %v1005_v15 = vmul.f32 %v2705_v40, %v996_v37 }
 0x3a6   : > { %v1010_v26 = vsel %vm998_vm5, %v1004_v13, 0.0  ;;  %v1011_v22 = vsel %vm763_vm8, %v1005_v15, 0.0  ;;  %vm1044_vm5 = vmand %vm728_vm9, %vm3577_vm11 }
 0x3a7   : > { %v1012_v11 = vadd.f32 %v1010_v26, %v989_v31  ;;  %v1013_v33 = vadd.f32 %v1011_v22, %v990_v53 }
 0x3a8   : > { %1375 = vrot.lane.b32.xlu0 %v2811_v3, %s2447_s16  ;;  %s2484_s16 = smov 79  }
 0x3a9   : > { %1814 = vrot.lane.b32.xlu2 %v2813_v4, %s2483_s29 }
 0x3aa   : > { %v1040_v25 = vpop.permute.xlu0 %1039  ;;  %v1015_v21 = vpop.permute.xlu1 %1014 }
 0x3ab   : > { %v1019_v6 = vsel %vm1018_vm14, %v1015_v21, %v1017_v54  ;;  %v1020_v7 = vsel %vm1018_vm14, %v1017_v54, %v1015_v21  ;;  %vm1064_vm14 = vcmp.lt.s32.totalorder %v2862_v9, 30 }
 0x3ac   : > { %v1027_v40 = vmul.f32 %v2709_v43, %v1020_v7  ;;  %v1028_v14 = vmul.f32 %v2709_v43, %v1019_v6 }
 0x3ae   : > { %v1033_v16 = vsel %vm728_vm9, %v1027_v40, 0.0  ;;  %v1036_v28 = vadd.f32 %v1028_v14, %v1013_v33 }
 0x3af   : > { %v1035_v17 = vadd.f32 %v1033_v16, %v1012_v11 }
 0x3b0   : > { %1398 = vrot.lane.b32.xlu0 %v2811_v3, %s2449_s18  ;;  %s2485_s18 = smov 78  }
 0x3b1   : > { %1837 = vrot.lane.b32.xlu2 %v2813_v4, %s2484_s16 }
 0x3b2   : > { %v1063_v0 = vpop.permute.xlu0 %1062  ;;  %v1038_v36 = vpop.permute.xlu1 %1037 }
 0x3b3   : > { %v1042_v43 = vsel %vm1041_vm12, %v1038_v36, %v1040_v25  ;;  %v1043_v39 = vsel %vm1041_vm12, %v1040_v25, %v1038_v36  ;;  %vm1067_vm12 = vmand %vm728_vm9, %vm774_vm2 }
 0x3b4   : > { %v1050_v35 = vmul.f32 %v2713_v47, %v1043_v39  ;;  %v1051_v1 = vmul.f32 %v2713_v47, %v1042_v43 }
 0x3b6   : > { %v1056_v44 = vsel %vm1044_vm5, %v1050_v35, 0.0  ;;  %v1057_v24 = vsel %vm3576_vm13, %v1051_v1, 0.0  ;;  %vm1087_vm5 = vcmp.lt.s32.totalorder %v2862_v9, 29 }
 0x3b7   : > { %v1058_v51 = vadd.f32 %v1056_v44, %v1035_v17  ;;  %v1059_v52 = vadd.f32 %v1057_v24, %v1036_v28 }
 0x3b8   : > { %1421 = vrot.lane.b32.xlu0 %v2811_v3, %s2451_s26  ;;  %s2486_s26 = smov 77  }
 0x3b9   : > { %1860 = vrot.lane.b32.xlu2 %v2813_v4, %s2485_s18 }
 0x3ba   : > { %v1086_v31 = vpop.permute.xlu0 %1085  ;;  %v1061_v53 = vpop.permute.xlu1 %1060 }
 0x3bb   : > { %v1065_v47 = vsel %vm1064_vm14, %v1061_v53, %v1063_v0  ;;  %v1066_v54 = vsel %vm1064_vm14, %v1063_v0, %v1061_v53  ;;  %vm1090_vm14 = vmand %vm728_vm9, %vm778_vm10 }
 0x3bc   : > { %v1073_v8 = vmul.f32 %v2717_v50, %v1066_v54  ;;  %v1074_v37 = vmul.f32 %v2717_v50, %v1065_v47 }
 0x3be   : > { %v1079_v19 = vsel %vm1067_vm12, %v1073_v8, 0.0  ;;  %v1080_v13 = vsel %vm3574_vm7, %v1074_v37, 0.0  ;;  %vm732_vm12 = vcmp.ge.s32.totalorder %v2862_v9, 16  ;;  %vm1110_vm7 = vcmp.lt.s32.totalorder %v2862_v9, 19 }
 0x3bf   : > { %v1081_v15 = vadd.f32 %v1079_v19, %v1058_v51  ;;  %v1082_v26 = vadd.f32 %v1080_v13, %v1059_v52  ;;  %vm1113_vm9 = vmand %vm732_vm12, %vm752_vm15 }
 0x3c0   : > { %1444 = vrot.lane.b32.xlu0 %v2811_v3, %s2453_s9  ;;  %s3594_s9 = smov 97  }
 0x3c1   : > { %1883 = vrot.lane.b32.xlu2 %v2813_v4, %s2486_s26 }
 0x3c2   : > { %v1109_v22 = vpop.permute.xlu0 %1108  ;;  %v1084_v11 = vpop.permute.xlu1 %1083 }
 0x3c3   : > { %v1088_v50 = vsel %vm1087_vm5, %v1084_v11, %v1086_v31  ;;  %v1089_v33 = vsel %vm1087_vm5, %v1086_v31, %v1084_v11  ;;  %vm1133_vm5 = vcmp.lt.s32.totalorder %v2862_v9, 18 }
 0x3c4   : > { %v1096_v25 = vmul.f32 %v2720_v59, %v1089_v33  ;;  %v1097_v21 = vmul.f32 %v2720_v59, %v1088_v50 }
 0x3c6   : > { %v1102_v6 = vsel %vm1090_vm14, %v1096_v25, 0.0  ;;  %v1103_v7 = vsel %vm779_vm1, %v1097_v21, 0.0  ;;  %vm1156_vm14 = vcmp.lt.s32.totalorder %v2862_v9, 17 }
 0x3c7   : > { %v1104_v40 = vadd.f32 %v1102_v6, %v1081_v15  ;;  %v1105_v14 = vadd.f32 %v1103_v7, %v1082_v26  ;;  %v3111_v6 = vpop.permute.xlu2 %1354 }
 0x3c8   : > { %1467 = vrot.lane.b32.xlu0 %v2811_v3, %s2455_s8  ;;  %s1974_s8 = scalar_lea.sflag [#allocation5], %s2614_s12 }
 0x3ca   : > { %v1132_v16 = vpop.permute.xlu0 %1131  ;;  %v1107_v28 = vpop.permute.xlu1 %1106 }
 0x3cb   : > { %v1111_v59 = vsel %vm1110_vm7, %v1107_v28, %v1109_v22  ;;  %v1112_v17 = vsel %vm1110_vm7, %v1109_v22, %v1107_v28  ;;  %vm1136_vm7 = vmand %vm732_vm12, %vm758_vm0 }
 0x3cc   : > { %v1119_v0 = vmul.f32 %v2724_v10, %v1112_v17  ;;  %v1120_v36 = vmul.f32 %v2724_v10, %v1111_v59 }
 0x3ce   : > { %v1125_v43 = vsel %vm1113_vm9, %v1119_v0, 0.0  ;;  %v1126_v39 = vsel %vm753_vm3, %v1120_v36, 0.0  ;;  %vm1159_vm9 = vmand %vm732_vm12, %vm3575_vm6 }
 0x3cf   : > { %v1127_v35 = vadd.f32 %v1125_v43, %v1104_v40  ;;  %v1128_v1 = vadd.f32 %v1126_v39, %v1105_v14 }
 0x3d0   : > { %1490 = vrot.lane.b32.xlu0 %v2811_v3, %s2457_s15 }
 0x3d2   : > { %v1155_v44 = vpop.permute.xlu0 %1154  ;;  %v1130_v24 = vpop.permute.xlu1 %1129 }
 0x3d3   : > { %v1134_v51 = vsel %vm1133_vm5, %v1130_v24, %v1132_v16  ;;  %v1135_v10 = vsel %vm1133_vm5, %v1132_v16, %v1130_v24  ;;  %vm1179_vm5 = vcmp.lt.s32.totalorder %v2862_v9, 16 }
 0x3d4   : > { %v1142_v52 = vmul.f32 %v2728_v20, %v1135_v10  ;;  %v1143_v31 = vmul.f32 %v2728_v20, %v1134_v51 }
 0x3d6   : > { %v1148_v53 = vsel %vm1136_vm7, %v1142_v52, 0.0  ;;  %v1149_v47 = vsel %vm759_vm4, %v1143_v31, 0.0  ;;  %vm1202_vm7 = vcmp.lt.s32.totalorder %v2862_v9, 15 }
 0x3d7   : > { %v1150_v54 = vadd.f32 %v1148_v53, %v1127_v35  ;;  %v1151_v8 = vadd.f32 %v1149_v47, %v1128_v1  ;;  %v3126_v35 = vpop.permute.xlu2 %1377 }
 0x3d8   : > { %1513 = vrot.lane.b32.xlu0 %v2811_v3, %s2459_s14  ;;  %s3595_s14 = smov 96  }
 0x3da   : > { %v1178_v37 = vpop.permute.xlu0 %1177  ;;  %v1153_v19 = vpop.permute.xlu1 %1152 }
 0x3db   : > { %v1157_v13 = vsel %vm1156_vm14, %v1153_v19, %v1155_v44  ;;  %v1158_v20 = vsel %vm1156_vm14, %v1155_v44, %v1153_v19  ;;  %vm1205_vm14 = vmand %vm732_vm12, %vm3577_vm11 }
 0x3dc   : > { %v1165_v15 = vmul.f32 %v2731_v23, %v1158_v20  ;;  %v1166_v26 = vmul.f32 %v2731_v23, %v1157_v13 }
 0x3de   : > { %v1171_v22 = vsel %vm1159_vm9, %v1165_v15, 0.0  ;;  %v1172_v11 = vsel %vm763_vm8, %v1166_v26, 0.0  ;;  %vm1225_vm9 = vcmp.lt.s32.totalorder %v2862_v9, 14 }
 0x3df   : > { %v1173_v50 = vadd.f32 %v1171_v22, %v1150_v54  ;;  %v1174_v33 = vadd.f32 %v1172_v11, %v1151_v8 }
 0x3e0   : > { %1536 = vrot.lane.b32.xlu0 %v2811_v3, %s2461_s24  ;;  %s3596_s24 = smov 95  }
 0x3e2   : > { %v1201_v25 = vpop.permute.xlu0 %1200  ;;  %v1176_v21 = vpop.permute.xlu1 %1175 }
 0x3e3   : > { %v1180_v7 = vsel %vm1179_vm5, %v1176_v21, %v1178_v37  ;;  %v1181_v40 = vsel %vm1179_vm5, %v1178_v37, %v1176_v21  ;;  %vm1228_vm5 = vmand %vm732_vm12, %vm774_vm2  ;;  %v3141_v37 = vpop.permute.xlu2 %1400 }
 0x3e4   : > { %v1188_v14 = vmul.f32 %v2734_v27, %v1181_v40  ;;  %v1189_v23 = vmul.f32 %v2734_v27, %v1180_v7  ;;  %v2487_v40 = vmov 42  }
 0x3e5   : > { %2268 = vset.pattern.permute.xlu1 %v2487_v40 }
 0x3e6   : > { %v1194_v16 = vsel %vm732_vm12, %v1188_v14, 0.0  ;;  %v1197_v28 = vadd.f32 %v1189_v23, %v1174_v33 }
 0x3e7   : > { %v1196_v59 = vadd.f32 %v1194_v16, %v1173_v50 }
 0x3e8   : > { %1559 = vrot.lane.b32.xlu0 %v2811_v3, %s2463_s10  ;;  %s3597_s10 = smov 94  }
 0x3ea   : > { %v1224_v17 = vpop.permute.xlu0 %1223  ;;  %v1199_v0 = vpop.permute.xlu1 %1198 }
 0x3eb   : > { %v1203_v36 = vsel %vm1202_vm7, %v1199_v0, %v1201_v25  ;;  %v1204_v43 = vsel %vm1202_vm7, %v1201_v25, %v1199_v0  ;;  %vm3593_vm7 = vcmp.lt.s32.totalorder %v2880_v32, 14  ;;  %v3157_v7 = vpop.permute.xlu2 %1423 }
 0x3ec   : > { %v1211_v27 = vmul.f32 %v2737_v30, %v1204_v43  ;;  %v1212_v39 = vmul.f32 %v2737_v30, %v1203_v36 }
 0x3ee   : > { %v1217_v1 = vsel %vm1205_vm14, %v1211_v27, 0.0  ;;  %v1218_v44 = vsel %vm3576_vm13, %v1212_v39, 0.0  ;;  %vm1248_vm14 = vcmp.lt.s32.totalorder %v2862_v9, 13 }
 0x3ef   : > { %v1219_v24 = vadd.f32 %v1217_v1, %v1196_v59  ;;  %v1220_v51 = vadd.f32 %v1218_v44, %v1197_v28 }
 0x3f0   : > { %1582 = vrot.lane.b32.xlu0 %v2811_v3, %s2465_s30  ;;  %s3599_s30 = smov 93  }
 0x3f2   : > { %v1247_v10 = vpop.permute.xlu0 %1246  ;;  %v1222_v52 = vpop.permute.xlu1 %1221 }
 0x3f3   : > { %v1226_v30 = vsel %vm1225_vm9, %v1222_v52, %v1224_v17  ;;  %v1227_v31 = vsel %vm1225_vm9, %v1224_v17, %v1222_v52  ;;  %vm1251_vm9 = vmand %vm732_vm12, %vm778_vm10  ;;  %vm1294_vm12 = vcmp.lt.s32.totalorder %v2862_v9, 2  ;;  %v2488_v52 = vmov 43  }
 0x3f4   : > { %v1234_v53 = vmul.f32 %v2740_v34, %v1227_v31  ;;  %v1235_v47 = vmul.f32 %v2740_v34, %v1226_v30 }
 0x3f6   : > { %v1240_v54 = vsel %vm1228_vm5, %v1234_v53, 0.0  ;;  %v1241_v8 = vsel %vm3593_vm7, %v1235_v47, 0.0  ;;  %vm1271_vm5 = vcmp.lt.s32.totalorder %v2862_v9, 3  ;;  %vm1356_vm7 = vcmp.lt.s32.totalorder %v2862_v9, 127 }
 0x3f7   : > { %v1242_v19 = vadd.f32 %v1240_v54, %v1219_v24  ;;  %v1243_v13 = vadd.f32 %v1241_v8, %v1220_v51  ;;  %v3174_v51 = vpop.permute.xlu2 %1446 }
 0x3f8   : > { %1605 = vrot.lane.b32.xlu0 %v2811_v3, %s2467_s27  ;;  %s3600_s27 = smov 83  }
 0x3fa   : > { %v1270_v20 = vpop.permute.xlu0 %1269  ;;  %v1245_v15 = vpop.permute.xlu1 %1244 }
 0x3fb   : > { %v1249_v34 = vsel %vm1248_vm14, %v1245_v15, %v1247_v10  ;;  %v1250_v26 = vsel %vm1248_vm14, %v1247_v10, %v1245_v15  ;;  %vm1317_vm14 = vcmp.lt.s32.totalorder %v2862_v9, 1 }
 0x3fc   : > { %v1257_v22 = vmul.f32 %v2743_v38, %v1250_v26  ;;  %v1258_v11 = vmul.f32 %v2743_v38, %v1249_v34  ;;  %v3162_v38 = vld [vmem:[%s3555_s3] sm:$0x3] }
 0x3fd   : > { %1753 = vperm.xlu1 %2268, %v3162_v38  }
 0x3fe   : > { %v1263_v50 = vsel %vm1251_vm9, %v1257_v22, 0.0  ;;  %v1264_v33 = vsel %vm779_vm1, %v1258_v11, 0.0  ;;  %vm1379_vm9 = vcmp.lt.s32.totalorder %v2862_v9, 126 }
 0x3ff   : > { %v1265_v25 = vadd.f32 %v1263_v50, %v1242_v19  ;;  %v1266_v21 = vadd.f32 %v1264_v33, %v1243_v13  ;;  %v3191_v26 = vpop.permute.xlu2 %1469 }
 0x400   : > { %1628 = vrot.lane.b32.xlu0 %v2811_v3, %s3594_s9  ;;  %s1988_s9 = sshll.u32 %s1985_s4, 4  ;;  %s1989_s9 = int_to_ptr.hbm [resolvable:$true] %s1988_s9 }
 0x401   : > { %s2341_s15 = sshra.s32 %s1989_s9, 4  ;;  %s2342_s15 = int_to_ptr.hbm [resolvable:$true] %s2341_s15 }
 0x402   : > { %v1293_v14 = vpop.permute.xlu0 %1292  ;;  %v1268_v23 = vpop.permute.xlu1 %1267  ;;  %p2348_p0 = scmp.lt.s32.totalorder %s2342_s15, %s3557_s5 }
 0x403   : > { %v1272_v16 = vsel %vm1271_vm5, %v1268_v23, %v1270_v20  ;;  %v1273_v28 = vsel %vm1271_vm5, %v1270_v20, %v1268_v23  ;;  %vm3598_vm5 = vcmp.lt.s32.totalorder %v2880_v32, 14 }
 0x404   : > { %v1280_v59 = vmul.f32 %v2748_v42, %v1273_v28  ;;  %v1281_v17 = vmul.f32 %v2748_v42, %v1272_v16 }
 0x405   : > { %2269 = vset.pattern.permute.xlu1 %v2488_v52 }
 0x406   : > { %v1286_v0 = vsel %vm752_vm15, %v1280_v59, 0.0  ;;  %v1287_v36 = vsel %vm753_vm3, %v1281_v17, 0.0  ;;  %1776 = vperm.xlu1 %2269, %v3162_v38  }
 0x407   : > { %v1288_v43 = vadd.f32 %v1286_v0, %v1265_v25  ;;  %v1289_v27 = vadd.f32 %v1287_v36, %v1266_v21  ;;  %v2489_v25 = vmov 44  }
 0x408   : > { %1651 = vrot.lane.b32.xlu0 %v2811_v3, %s3595_s14  ;;  %s2343_s14 = scalar_lea.hbm %s2342_s15, 32 }
 0x409   : > { %p2344_p6 = scmp.ne.s32.totalorder %s2342_s15, %s2343_s14 }
 0x40a   : > { %v1316_v39 = vpop.permute.xlu0 %1315  ;;  %v1291_v1 = vpop.permute.xlu1 %1290 }
 0x40b   : > { %v1295_v44 = vsel %vm1294_vm12, %v1291_v1, %v1293_v14  ;;  %v1296_v24 = vsel %vm1294_vm12, %v1293_v14, %v1291_v1  ;;  %vm1402_vm12 = vcmp.lt.s32.totalorder %v2862_v9, 125  ;;  %p2345_p9 = pnand %p2344_p6, %p2578_p11 }
 0x40c   : > { %v1303_v42 = vmul.f32 %v2753_v46, %v1296_v24  ;;  %v1304_v10 = vmul.f32 %v2753_v46, %v1295_v44  ;;  %v2490_v44 = vmov 45   ;;  %v3219_v24 = vpop.permute.xlu2 %1492 }
 0x40d   : > { %p2346_p13 = pneg %p2345_p9 }
 0x40e   : > { %v1309_v30 = vsel %vm758_vm0, %v1303_v42, 0.0  ;;  %v1310_v31 = vsel %vm759_vm4, %v1304_v10, 0.0  ;;  %2270 = vset.pattern.permute.xlu1 %v2489_v25 }
 0x40f   : > { %v1311_v53 = vadd.f32 %v1309_v30, %v1288_v43  ;;  %v1312_v47 = vadd.f32 %v1310_v31, %v1289_v27  ;;  %1799 = vperm.xlu1 %2270, %v3162_v38  }
 0x410   : > { %1674 = vrot.lane.b32.xlu0 %v2811_v3, %s3596_s24 }
 0x412   : > { %v1353_v46 = vpop.permute.xlu0 %1352  ;;  %v1314_v54 = vpop.permute.xlu1 %1313 }
 0x413   : > { %v1357_v8 = vsel %vm1356_vm7, %v1353_v46, %v3111_v6  ;;  %v1358_v19 = vsel %vm1356_vm7, %v3111_v6, %v1353_v46  ;;  %v1318_v13 = vsel %vm1317_vm14, %v1314_v54, %v1316_v39  ;;  %v1319_v20 = vsel %vm1317_vm14, %v1316_v39, %v1314_v54 }
 0x414   : > { %v1326_v15 = vmul.f32 %v2856_v5, %v1319_v20  ;;  %v1327_v34 = vmul.f32 %v2856_v5, %v1318_v13  ;;  %v1365_v22 = vmul.f32 %v2751_v45, %v1357_v8  ;;  %v1366_v11 = vmul.f32 %v2751_v45, %v1358_v19 }
 0x415   : > { %v1342_v6 = vmul.f32 %v2746_v41, %v2811_v3  ;;  %v1343_v5 = vmul.f32 %v2746_v41, %v2813_v4  ;;  %vm741_vm7 = vcmp.lt.s32.totalorder %v2874_v18, 240  ;;  %vm1425_vm14 = vcmp.lt.s32.totalorder %v2862_v9, 115 }
 0x416   : > { %v1332_v50 = vsel %vm3575_vm6, %v1326_v15, 0.0  ;;  %v1333_v33 = vsel %vm763_vm8, %v1327_v34, 0.0  ;;  %v1371_v23 = vsel %vm3577_vm11, %v1365_v22, 0.0  ;;  %v1372_v16 = vsel %vm3576_vm13, %v1366_v11, 0.0 }
 0x417   : > { %v1334_v21 = vadd.f32 %v1332_v50, %v1311_v53  ;;  %v1335_v40 = vadd.f32 %v1333_v33, %v1312_v47  ;;  %2271 = vset.pattern.permute.xlu1 %v2490_v44  ;;  %v2492_v11 = vmov 47  }
 0x418   : > { %1697 = vrot.lane.b32.xlu0 %v2811_v3, %s3597_s10  ;;  %1822 = vperm.xlu1 %2271, %v3162_v38  }
 0x419   : > { %v1350_v45 = vadd.f32 %v1342_v6, %v1334_v21  ;;  %v1351_v14 = vadd.f32 %v1343_v5, %v1335_v40 }
 0x41a   : > { %v1376_v28 = vpop.permute.xlu0 %1375 }
 0x41b   : > { %v1373_v59 = vadd.f32 %v1371_v23, %v1350_v45  ;;  %v1374_v41 = vadd.f32 %v1372_v16, %v1351_v14  ;;  %v1380_v4 = vsel %vm1379_vm9, %v1376_v28, %v3126_v35  ;;  %v1381_v17 = vsel %vm1379_vm9, %v3126_v35, %v1376_v28  ;;  %vm1429_vm9 = vmand %vm741_vm7, %vm753_vm3 }
 0x41c   : > { %v1388_v0 = vmul.f32 %v2756_v49, %v1380_v4  ;;  %v1389_v36 = vmul.f32 %v2756_v49, %v1381_v17  ;;  %v2493_v14 = vmov 48  }
 0x41d   : > { %2275 = vset.pattern.permute.xlu0 %v2493_v14 }
 0x41e   : > { %v1394_v43 = vsel %vm774_vm2, %v1388_v0, 0.0  ;;  %v1395_v27 = vsel %vm3598_vm5, %v1389_v36, 0.0  ;;  %vm1448_vm5 = vcmp.lt.s32.totalorder %v2862_v9, 114 }
 0x41f   : > { %v1396_v39 = vadd.f32 %v1394_v43, %v1373_v59  ;;  %v1397_v1 = vadd.f32 %v1395_v27, %v1374_v41 }
 0x420   : > { %1720 = vrot.lane.b32.xlu0 %v2811_v3, %s3599_s30  ;;  %s2347_s30 = scalar_lea.hbm %s3557_s5, 64 }
 0x421   : > { %p2349_p1 = scmp.lt.s32.totalorder %s2347_s30, %s2343_s14 }
 0x422   : > { %v1399_v49 = vpop.permute.xlu0 %1398 }
 0x423   : > { %v1403_v35 = vsel %vm1402_vm12, %v1399_v49, %v3141_v37  ;;  %v1404_v42 = vsel %vm1402_vm12, %v3141_v37, %v1399_v49  ;;  %v2491_v37 = vmov 46   ;;  %vm1452_vm12 = vmand %vm741_vm7, %vm759_vm4  ;;  %p2350_p3 = por %p2349_p1, %p2348_p0 }
 0x424   : > { %v1411_v10 = vmul.f32 %v2759_v56, %v1403_v35  ;;  %v1412_v52 = vmul.f32 %v2759_v56, %v1404_v42  ;;  %2272 = vset.pattern.permute.xlu1 %v2491_v37  ;;  %v1516_v56 = vpop.permute.xlu2 %1515 }
 0x425   : > { %1845 = vperm.xlu1 %2272, %v3162_v38   ;;  %p2351_p4 = pnand %p2350_p3, %p2346_p13 }
 0x426   : > { %v1417_v30 = vsel %vm778_vm10, %v1411_v10, 0.0  ;;  %v1418_v31 = vsel %vm779_vm1, %v1412_v52, 0.0 }
 0x427   : > { %v1419_v53 = vadd.f32 %v1417_v30, %v1396_v39  ;;  %v1420_v47 = vadd.f32 %v1418_v31, %v1397_v1 }
 0x428   : > { %1743 = vrot.lane.b32.xlu0 %v2811_v3, %s3600_s27 }
 0x42a   : > { %v1422_v46 = vpop.permute.xlu0 %1421 }
 0x42b   : > { %v1426_v54 = vsel %vm1425_vm14, %v1422_v46, %v3157_v7  ;;  %v1427_v8 = vsel %vm1425_vm14, %v3157_v7, %v1422_v46  ;;  %vm1471_vm14 = vcmp.lt.s32.totalorder %v2862_v9, 113 }
 0x42c   : > { %v1434_v19 = vmul.f32 %v2762_v2, %v1426_v54  ;;  %v1435_v13 = vmul.f32 %v2762_v2, %v1427_v8  ;;  %v1539_v33 = vpop.permute.xlu2 %1538 }
 0x42d   : > { %2273 = vset.pattern.permute.xlu1 %v2492_v11 }
 0x42e   : > { %v1440_v20 = vsel %vm752_vm15, %v1434_v19, 0.0  ;;  %v1441_v15 = vsel %vm1429_vm9, %v1435_v13, 0.0  ;;  %1868 = vperm.xlu1 %2273, %v3162_v38   ;;  %vm1475_vm9 = vmand %vm741_vm7, %vm763_vm8 }
 0x42f   : > { %v1442_v34 = vadd.f32 %v1440_v20, %v1419_v53  ;;  %v1443_v22 = vadd.f32 %v1441_v15, %v1420_v47 }
 0x430   : > { %1766 = vrot.lane.b32.xlu0 %v2811_v3, %s2481_s13  ;;  %s1919_s13 = sld [smem:[#allocation2]] }
 0x432   : > { %v1445_v50 = vpop.permute.xlu0 %1444 }
 0x433   : > { %v1449_v2 = vsel %vm1448_vm5, %v1445_v50, %v3174_v51  ;;  %v1450_v7 = vsel %vm1448_vm5, %v3174_v51, %v1445_v50  ;;  %vm1494_vm5 = vcmp.lt.s32.totalorder %v2862_v9, 112 }
 0x434   : > { %v1457_v25 = vmul.f32 %v2764_v12, %v1449_v2  ;;  %v1458_v6 = vmul.f32 %v2764_v12, %v1450_v7  ;;  %v1562_v59 = vpop.permute.xlu2 %1561 }
 0x436   : > { %v1463_v5 = vsel %vm758_vm0, %v1457_v25, 0.0  ;;  %v1464_v21 = vsel %vm1452_vm12, %v1458_v6, 0.0  ;;  %2274 = vset.pattern.permute.xlu1 %v2493_v14  ;;  %vm1517_vm12 = vcmp.lt.s32.totalorder %v2862_v9, 111 }
 0x437   : > { %v1465_v40 = vadd.f32 %v1463_v5, %v1442_v34  ;;  %v1466_v45 = vadd.f32 %v1464_v21, %v1443_v22  ;;  %1891 = vperm.xlu1 %2274, %v3162_v38  }
 0x438   : > { %1789 = vrot.lane.b32.xlu0 %v2811_v3, %s2482_s17 }
 0x43a   : > { %v1468_v23 = vpop.permute.xlu0 %1467 }
 0x43b   : > { %v1472_v12 = vsel %vm1471_vm14, %v1468_v23, %v3191_v26  ;;  %v1473_v51 = vsel %vm1471_vm14, %v3191_v26, %v1468_v23  ;;  %vm1521_vm14 = vmand %vm741_vm7, %vm3576_vm13 }
 0x43c   : > { %v1480_v16 = vmul.f32 %v2766_v48, %v1472_v12  ;;  %v1481_v28 = vmul.f32 %v2766_v48, %v1473_v51  ;;  %v1585_v44 = vpop.permute.xlu2 %1584 }
 0x43e   : > { %v1486_v41 = vsel %vm3575_vm6, %v1480_v16, 0.0  ;;  %v1487_v4 = vsel %vm1475_vm9, %v1481_v28, 0.0  ;;  %vm1540_vm9 = vcmp.lt.s32.totalorder %v2862_v9, 110 }
 0x43f   : > { %v1488_v17 = vadd.f32 %v1486_v41, %v1465_v40  ;;  %v1489_v0 = vadd.f32 %v1487_v4, %v1466_v45 }
 0x440   : > { %1812 = vrot.lane.b32.xlu0 %v2811_v3, %s2483_s29 }
 0x442   : > { %v1491_v36 = vpop.permute.xlu0 %1490 }
 0x443   : > { %v1495_v26 = vsel %vm1494_vm5, %v1491_v36, %v3219_v24  ;;  %v1496_v38 = vsel %vm1494_vm5, %v3219_v24, %v1491_v36  ;;  %vm3601_vm5 = vcmp.lt.s32.totalorder %v2880_v32, 14 }
 0x444   : > { %v1503_v43 = vmul.f32 %v2768_v55, %v1495_v26  ;;  %v1504_v48 = vmul.f32 %v2768_v55, %v1496_v38  ;;  %v1608_v53 = vpop.permute.xlu2 %1607 }
 0x446   : > { %v1510_v27 = vsel %vm741_vm7, %v1504_v48, 0.0  ;;  %v1511_v39 = vadd.f32 %v1503_v43, %v1488_v17 }
 0x447   : > { %v1512_v1 = vadd.f32 %v1510_v27, %v1489_v0 }
 0x448   : > { %1835 = vrot.lane.b32.xlu0 %v2811_v3, %s2484_s16  ;;  %s3631_s16 = sshll.u32 %s2614_s12, 5 }
 0x44a   : > { %v1514_v49 = vpop.permute.xlu0 %1513 }
 0x44b   : > { %v1518_v24 = vsel %vm1517_vm12, %v1514_v49, %v1516_v56  ;;  %v1519_v35 = vsel %vm1517_vm12, %v1516_v56, %v1514_v49  ;;  %vm1544_vm12 = vmand %vm741_vm7, %vm3601_vm5  ;;  %vm745_vm5 = vcmp.lt.s32.totalorder %v2874_v18, 224 }
 0x44c   : > { %v1526_v55 = vmul.f32 %v2770_v57, %v1518_v24  ;;  %v1527_v42 = vmul.f32 %v2770_v57, %v1519_v35 }
 0x44e   : > { %v1532_v10 = vsel %vm3577_vm11, %v1526_v55, 0.0  ;;  %v1533_v52 = vsel %vm1521_vm14, %v1527_v42, 0.0  ;;  %vm1563_vm14 = vcmp.lt.s32.totalorder %v2862_v9, 109 }
 0x44f   : > { %v1534_v30 = vadd.f32 %v1532_v10, %v1511_v39  ;;  %v1535_v31 = vadd.f32 %v1533_v52, %v1512_v1 }
 0x450   : > { %1858 = vrot.lane.b32.xlu0 %v2811_v3, %s2485_s18  ;;  %s245_s18 = scalar_lea.vmem [#allocation6], %s3631_s16 }
 0x452   : > { %v1537_v47 = vpop.permute.xlu0 %1536 }
 0x453   : > { %v1541_v37 = vsel %vm1540_vm9, %v1537_v47, %v1539_v33  ;;  %v1542_v57 = vsel %vm1540_vm9, %v1539_v33, %v1537_v47  ;;  %vm1567_vm9 = vmand %vm741_vm7, %vm779_vm1 }
 0x454   : > { %v1549_v56 = vmul.f32 %v2772_v58, %v1541_v37  ;;  %v1550_v46 = vmul.f32 %v2772_v58, %v1542_v57  ;;  %v1631_v58 = vpop.permute.xlu2 %1630  ;;  %vm1590_vm7 = vmand %vm745_vm5, %vm753_vm3 }
 0x456   : > { %v1555_v54 = vsel %vm774_vm2, %v1549_v56, 0.0  ;;  %v1556_v8 = vsel %vm1544_vm12, %v1550_v46, 0.0  ;;  %vm1586_vm12 = vcmp.lt.s32.totalorder %v2862_v9, 99 }
 0x457   : > { %v1557_v19 = vadd.f32 %v1555_v54, %v1534_v30  ;;  %v1558_v13 = vadd.f32 %v1556_v8, %v1535_v31 }
 0x458   : > { %1881 = vrot.lane.b32.xlu0 %v2811_v3, %s2486_s26  ;;  %s1986_s26 = sshll.u32 %s245_s18, 4  ;;  %s1987_s26 = int_to_ptr.vmem [resolvable:$true] %s1986_s26 }
 0x45a   : > { %v1560_v20 = vpop.permute.xlu0 %1559 }
 0x45b   : > { %v1564_v15 = vsel %vm1563_vm14, %v1560_v20, %v1562_v59  ;;  %v1565_v34 = vsel %vm1563_vm14, %v1562_v59, %v1560_v20  ;;  %vm1609_vm14 = vcmp.lt.s32.totalorder %v2862_v9, 98  ;;  %v3602_v20 = vld [vmem:[#allocation9_spill] sm:$0xff] }
 0x45c   : > { %v1572_v22 = vmul.f32 %v2774_v60, %v1564_v15  ;;  %v1573_v11 = vmul.f32 %v2774_v60, %v1565_v34  ;;  %v1654_v21 = vpop.permute.xlu2 %1653 }
 0x45e   : > { %v1578_v50 = vsel %vm778_vm10, %v1572_v22, 0.0  ;;  %v1579_v2 = vsel %vm1567_vm9, %v1573_v11, 0.0  ;;  %vm1613_vm9 = vmand %vm745_vm5, %vm759_vm4 }
 0x45f   : > { %v1580_v3 = vadd.f32 %v1578_v50, %v1557_v19  ;;  %v1581_v7 = vadd.f32 %v1579_v2, %v1558_v13 }
 0x462   : > { %v1583_v33 = vpop.permute.xlu0 %1582 }
 0x463   : > { %v1587_v25 = vsel %vm1586_vm12, %v1583_v33, %v1585_v44  ;;  %v1588_v6 = vsel %vm1586_vm12, %v1585_v44, %v1583_v33  ;;  %vm1632_vm12 = vcmp.lt.s32.totalorder %v2862_v9, 97 }
 0x464   : > { %v1595_v60 = vmul.f32 %v2776_v61, %v1587_v25  ;;  %v1596_v5 = vmul.f32 %v2776_v61, %v1588_v6  ;;  %v1677_v0 = vpop.permute.xlu2 %1676 }
 0x466   : > { %v1601_v40 = vsel %vm752_vm15, %v1595_v60, 0.0  ;;  %v1602_v45 = vsel %vm1590_vm7, %v1596_v5, 0.0  ;;  %vm1636_vm7 = vmand %vm745_vm5, %vm763_vm8 }
 0x467   : > { %v1603_v14 = vadd.f32 %v1601_v40, %v1580_v3  ;;  %v1604_v23 = vadd.f32 %v1602_v45, %v1581_v7  ;;  %v3606_v40 = vld [vmem:[#allocation11_spill] sm:$0xff] }
 0x46a   : > { %v1606_v12 = vpop.permute.xlu0 %1605 }
 0x46b   : > { %v1610_v51 = vsel %vm1609_vm14, %v1606_v12, %v1608_v53  ;;  %v1611_v16 = vsel %vm1609_vm14, %v1608_v53, %v1606_v12  ;;  %vm1655_vm14 = vcmp.lt.s32.totalorder %v2862_v9, 96 }
 0x46c   : > { %v1618_v28 = vmul.f32 %v2778_v62, %v1610_v51  ;;  %v1619_v61 = vmul.f32 %v2778_v62, %v1611_v16  ;;  %v1700_v44 = vpop.permute.xlu2 %1699  ;;  %v3610_v16 = vld [vmem:[#allocation12_spill] sm:$0xff] }
 0x46e   : > { %v1624_v59 = vsel %vm758_vm0, %v1618_v28, 0.0  ;;  %v1625_v41 = vsel %vm1613_vm9, %v1619_v61, 0.0  ;;  %vm1678_vm9 = vcmp.lt.s32.totalorder %v2862_v9, 95 }
 0x46f   : > { %v1626_v4 = vadd.f32 %v1624_v59, %v1603_v14  ;;  %v1627_v17 = vadd.f32 %v1625_v41, %v1604_v23  ;;  %v1754_v42 = vpop.permute.xlu1 %1753 }
 0x472   : > { %v1629_v36 = vpop.permute.xlu0 %1628 }
 0x473   : > { %v1633_v26 = vsel %vm1632_vm12, %v1629_v36, %v1631_v58  ;;  %v1634_v38 = vsel %vm1632_vm12, %v1631_v58, %v1629_v36  ;;  %vm1701_vm12 = vcmp.lt.s32.totalorder %v2862_v9, 94  ;;  %v3603_v58 = vld [vmem:[#allocation10_spill] sm:$0xff] }
 0x474   : > { %v1641_v43 = vmul.f32 %v2780_v63, %v1633_v26  ;;  %v1642_v62 = vmul.f32 %v2780_v63, %v1634_v38  ;;  %v1723_v35 = vpop.permute.xlu2 %1722 }
 0x476   : > { %v1647_v48 = vsel %vm3575_vm6, %v1641_v43, 0.0  ;;  %v1648_v27 = vsel %vm1636_vm7, %v1642_v62, 0.0  ;;  %vm1724_vm7 = vcmp.lt.s32.totalorder %v2862_v9, 93  ;;  %vm1747_vm6 = vcmp.lt.s32.totalorder %v2862_v9, 83 }
 0x477   : > { %v1649_v39 = vadd.f32 %v1647_v48, %v1626_v4  ;;  %v1650_v1 = vadd.f32 %v1648_v27, %v1627_v17 }
 0x478   : > { %v1777_v30 = vpop.permute.xlu1 %1776 }
 0x47a   : > { %v1652_v49 = vpop.permute.xlu0 %1651 }
 0x47b   : > { %v1657_v54 = vsel %vm1655_vm14, %v1654_v21, %v1652_v49  ;;  %v1656_v19 = vsel %vm1655_vm14, %v1652_v49, %v1654_v21  ;;  %vm3371_vm14 = vmand %vm745_vm5, %vm3576_vm13 }
 0x47c   : > { %v1746_v10 = vpop.permute.xlu2 %1745  ;;  %v1665_v15 = vmul.f32 %v3602_v20, %v1657_v54  ;;  %v1664_v11 = vmul.f32 %v3602_v20, %v1656_v19 }
 0x47e   : > { %v1671_v6 = vsel %vm745_vm5, %v1665_v15, 0.0  ;;  %v1672_v12 = vadd.f32 %v1664_v11, %v1649_v39 }
 0x47f   : > { %v1673_v59 = vadd.f32 %v1671_v6, %v1650_v1 }
 0x481   : > { %v3346_v47 = vpop.permute.xlu1 %1799 }
 0x482   : > { %v1675_v24 = vpop.permute.xlu0 %1674 }
 0x483   : > { %v1679_v8 = vsel %vm1678_vm9, %v1675_v24, %v1677_v0  ;;  %v1680_v34 = vsel %vm1678_vm9, %v1677_v0, %v1675_v24  ;;  %vm1770_vm9 = vcmp.lt.s32.totalorder %v2862_v9, 82 }
 0x484   : > { %v1769_v31 = vpop.permute.xlu2 %1768  ;;  %v1687_v22 = vmul.f32 %v3603_v58, %v1679_v8  ;;  %v1688_v33 = vmul.f32 %v3603_v58, %v1680_v34 }
 0x486   : > { %v1693_v21 = vsel %vm3577_vm11, %v1687_v22, 0.0  ;;  %v1694_v41 = vsel %vm3371_vm14, %v1688_v33, 0.0  ;;  %vm1793_vm11 = vcmp.lt.s32.totalorder %v2862_v9, 81  ;;  %vm3623_vm14 = vcmp.lt.s32.totalorder %v2880_v32, 14 }
 0x487   : > { %v1695_v0 = vadd.f32 %v1693_v21, %v1672_v12  ;;  %v1696_v39 = vadd.f32 %v1694_v41, %v1673_v59 }
 0x48a   : > { %v1698_v55 = vpop.permute.xlu0 %1697  ;;  %v3348_v56 = vpop.permute.xlu1 %1822 }
 0x48b   : > { %v1702_v50 = vsel %vm1701_vm12, %v1698_v55, %v1700_v44  ;;  %v1703_v2 = vsel %vm1701_vm12, %v1700_v44, %v1698_v55  ;;  %vm3607_vm12 = vcmp.lt.s32.totalorder %v2880_v32, 14 }
 0x48c   : > { %v1792_v63 = vpop.permute.xlu2 %1791  ;;  %v1710_v45 = vmul.f32 %v3606_v40, %v1702_v50  ;;  %v1711_v14 = vmul.f32 %v3606_v40, %v1703_v2  ;;  %vm3386_vm13 = vmand %vm745_vm5, %vm3607_vm12 }
 0x48d   : > { %vm3402_vm12 = vmand %vm745_vm5, %vm779_vm1 }
 0x48e   : > { %v1716_v62 = vsel %vm774_vm2, %v1710_v45, 0.0  ;;  %v1717_v48 = vsel %vm3386_vm13, %v1711_v14, 0.0  ;;  %vm1839_vm13 = vcmp.lt.s32.totalorder %v2862_v9, 79 }
 0x492   : > { %v1721_v52 = vpop.permute.xlu0 %1720 }
 0x493   : > { %v1725_v25 = vsel %vm1724_vm7, %v1721_v52, %v1723_v35  ;;  %v1726_v5 = vsel %vm1724_vm7, %v1723_v35, %v1721_v52  ;;  %vm749_vm7 = vcmp.lt.s32.totalorder %v2874_v18, 208  ;;  %v1719_v52 = vadd.f32 %v1717_v48, %v1696_v39 }
 0x494   : > { %v3350_v46 = vpop.permute.xlu2 %1814  ;;  %v1733_v28 = vmul.f32 %v3610_v16, %v1725_v25  ;;  %v1734_v4 = vmul.f32 %v3610_v16, %v1726_v5  ;;  %vm3421_vm5 = vmand %vm749_vm7, %vm753_vm3 }
 0x495   : > { %vm3434_vm3 = vmand %vm749_vm7, %vm759_vm4 }
 0x496   : > { %v1739_v1 = vsel %vm778_vm10, %v1733_v28, 0.0  ;;  %v1740_v35 = vsel %vm3402_vm12, %v1734_v4, 0.0  ;;  %vm3451_vm4 = vmand %vm749_vm7, %vm763_vm8  ;;  %vm3619_vm8 = vcmp.ge.s32.totalorder %v2877_v29, 1  ;;  %vm3626_vm12 = vcmp.lt.s32.totalorder %v2877_v29, 15 }
 0x497   : > { %v3362_v3 = vpop.permute.xlu1 %1845  ;;  %v1742_v20 = vadd.f32 %v1740_v35, %v1719_v52 }
 0x49a   : > { %v1744_v53 = vpop.permute.xlu0 %1743 }
 0x49b   : > { %v1748_v23 = vsel %vm1747_vm6, %v1744_v53, %v1746_v10  ;;  %v1749_v61 = vsel %vm1747_vm6, %v1746_v10, %v1744_v53  ;;  %vm1816_vm6 = vcmp.lt.s32.totalorder %v2862_v9, 80  ;;  %v1718_v10 = vadd.f32 %v1716_v62, %v1695_v0 }
 0x49c   : > { %v1838_v7 = vpop.permute.xlu2 %1837  ;;  %v1756_v26 = vmul.f32 %v1754_v42, %v1748_v23  ;;  %v1757_v27 = vmul.f32 %v1754_v42, %v1749_v61 }
 0x49d   : > { %v1741_v19 = vadd.f32 %v1739_v1, %v1718_v10 }
 0x4a2   : > { %v1767_v37 = vpop.permute.xlu0 %1766 }
 0x4a3   : > { %v1771_v38 = vsel %vm1770_vm9, %v1767_v37, %v1769_v31  ;;  %v1772_v43 = vsel %vm1770_vm9, %v1769_v31, %v1767_v37  ;;  %v1762_v31 = vsel %vm752_vm15, %v1756_v26, 0.0  ;;  %vm1862_vm15 = vcmp.lt.s32.totalorder %v2862_v9, 78  ;;  %vm3489_vm9 = vmand %vm749_vm7, %vm3623_vm14 }
 0x4a4   : > { %v1779_v55 = vmul.f32 %v1777_v30, %v1771_v38  ;;  %v1780_v42 = vmul.f32 %v1777_v30, %v1772_v43  ;;  %v1861_v37 = vpop.permute.xlu2 %1860  ;;  %v1764_v33 = vadd.f32 %v1762_v31, %v1741_v19 }
 0x4a6   : > { %v1786_v22 = vsel %vm3434_vm3, %v1780_v42, 0.0 }
 0x4aa   : > { %v1790_v57 = vpop.permute.xlu0 %1789 }
 0x4ab   : > { %v1794_v49 = vsel %vm1793_vm11, %v1790_v57, %v1792_v63  ;;  %v1795_v24 = vsel %vm1793_vm11, %v1792_v63, %v1790_v57  ;;  %v1869_v63 = vpop.permute.xlu1 %1868  ;;  %v1763_v57 = vsel %vm3421_vm5, %v1757_v27, 0.0  ;;  %vm1889_vm5 = vmand %vm749_vm7, %vm779_vm1 }
 0x4ac   : > { %v1802_v54 = vmul.f32 %v3346_v47, %v1794_v49  ;;  %v1803_v8 = vmul.f32 %v3346_v47, %v1795_v24  ;;  %v1785_v47 = vsel %vm758_vm0, %v1779_v55, 0.0  ;;  %v1765_v25 = vadd.f32 %v1763_v57, %v1742_v20 }
 0x4ad   : > { %v1787_v45 = vadd.f32 %v1785_v47, %v1764_v33  ;;  %vm3620_vm0 = vcmp.lt.s32.totalorder %v2880_v32, 15 }
 0x4ae   : > { %v1809_v5 = vsel %vm3451_vm4, %v1803_v8, 0.0  ;;  %v1788_v14 = vadd.f32 %v1786_v22, %v1765_v25  ;;  %vm3479_vm11 = vmand %vm749_vm7, %vm3620_vm0 }
 0x4b0   : > { %v1811_v28 = vadd.f32 %v1809_v5, %v1788_v14 }
 0x4b2   : > { %v3355_v13 = vpop.permute.xlu0 %1812 }
 0x4b3   : > { %v1818_v30 = vsel %vm1816_vm6, %v3350_v46, %v3355_v13  ;;  %v1817_v11 = vsel %vm1816_vm6, %v3355_v13, %v3350_v46  ;;  %vm1885_vm6 = vcmp.lt.s32.totalorder %v2862_v9, 77  ;;  %v1892_v4 = vpop.permute.xlu1 %1891 }
 0x4b4   : > { %v1826_v50 = vmul.f32 %v3348_v56, %v1818_v30  ;;  %v1825_v46 = vmul.f32 %v3348_v56, %v1817_v11 }
 0x4b6   : > { %v1832_v23 = vsel %vm749_vm7, %v1826_v50, 0.0 }
 0x4b7   : > { %v1834_v41 = vadd.f32 %v1832_v23, %v1811_v28 }
 0x4ba   : > { %v1836_v17 = vpop.permute.xlu0 %1835 }
 0x4bb   : > { %v1840_v34 = vsel %vm1839_vm13, %v1836_v17, %v1838_v7  ;;  %v1841_v58 = vsel %vm1839_vm13, %v1838_v7, %v1836_v17  ;;  %v1808_v7 = vsel %vm3619_vm8, %v1802_v54, 0.0  ;;  %v1884_v17 = vpop.permute.xlu2 %1883  ;;  %vm1904_vm13 = vcmask 1041408  }
 0x4bc   : > { %v1848_v21 = vmul.f32 %v3362_v3, %v1840_v34  ;;  %v1849_v40 = vmul.f32 %v3362_v3, %v1841_v58  ;;  %v1810_v16 = vadd.f32 %v1808_v7, %v1787_v45  ;;  %v1920_v54 = vstv %s1919_s13 }
 0x4be   : > { %v1854_v3 = vsel %vm3626_vm12, %v1848_v21, 0.0  ;;  %v1855_v61 = vsel %vm3479_vm11, %v1849_v40, 0.0  ;;  %v1833_v59 = vadd.f32 %v1825_v46, %v1810_v16 }
 0x4bf   : > { %v1857_v43 = vadd.f32 %v1855_v61, %v1834_v41 }
 0x4c0   : > { %v1856_v38 = vadd.f32 %v1854_v3, %v1833_v59  ;;  %v3627_v59 = vld [vmem:[#allocation13_spill] sm:$0xff] }
 0x4c2   : > { %v1859_v2 = vpop.permute.xlu0 %1858 }
 0x4c3   : > { %v1863_v6 = vsel %vm1862_vm15, %v1859_v2, %v1861_v37  ;;  %v1864_v60 = vsel %vm1862_vm15, %v1861_v37, %v1859_v2 }
 0x4c4   : > { %v1871_v12 = vmul.f32 %v1869_v63, %v1863_v6  ;;  %v1872_v51 = vmul.f32 %v1869_v63, %v1864_v60 }
 0x4c6   : > { %v1877_v0 = vsel %vm774_vm2, %v1871_v12, 0.0  ;;  %v1878_v36 = vsel %vm3489_vm9, %v1872_v51, 0.0 }
 0x4c7   : > { %v1879_v39 = vadd.f32 %v1877_v0, %v1856_v38  ;;  %v1880_v1 = vadd.f32 %v1878_v36, %v1857_v43  ;;  %v3629_v0 = vld [vmem:[#allocation14_spill] sm:$0xff]  ;;  %v2293_v43 = vld [vmem:[%s2620_s19] sm:$0xff] }
 0x4ca   : > { %v1882_v26 = vpop.permute.xlu0 %1881 }
 0x4cb   : > { %v1886_v62 = vsel %vm1885_vm6, %v1882_v26, %v1884_v17  ;;  %v1887_v9 = vsel %vm1885_vm6, %v1884_v17, %v1882_v26  ;;  %v3630_v26 = vld [vmem:[#allocation16_spill] sm:$0xff] }
 0x4cc   : > { %v1894_v48 = vmul.f32 %v1892_v4, %v1886_v62  ;;  %v1895_v27 = vmul.f32 %v1892_v4, %v1887_v9  ;;  %v3628_v4 = vld [vmem:[#allocation15_spill] sm:$0xff] }
 0x4cd   : > { %v2294_v9 = vld [vmem:[%s2620_s19 + $0x10] sm:$0xff] }
 0x4ce   : > { %v1900_v44 = vsel %vm778_vm10, %v1894_v48, 0.0  ;;  %v1901_v49 = vsel %vm1889_vm5, %v1895_v27, 0.0  ;;  %v2295_v27 = vld [vmem:[%s2620_s19 + $0x8] sm:$0xff] }
 0x4cf   : > { %v1902_v24 = vadd.f32 %v1900_v44, %v1879_v39  ;;  %v1903_v35 = vadd.f32 %v1901_v49, %v1880_v1  ;;  %v2296_v1 = vld [vmem:[%s2620_s19 + $0x18] sm:$0xff] }
 0x4d1   : > { %v1905_v55 = vsel %vm1904_vm13, %v1902_v24, 0.0  ;;  %v1912_v42 = vsel %vm1904_vm13, %v1903_v35, 0.0 }
 0x4d2   : > { %v1906_v10 = vrot.slane %v1905_v55, 4  ;;  %v1913_v32 = vrot.slane %v1912_v42, 4 }
 0x4d4   : > { %v1907_v18 = vadd.f32 %v1906_v10, %v1905_v55  ;;  %v1914_v52 = vadd.f32 %v1913_v32, %v1912_v42 }
 0x4d6   : > { %v1908_v31 = vrot.slane %v1907_v18, 2  ;;  %v1915_v53 = vrot.slane %v1914_v52, 2 }
 0x4d8   : > { %v1909_v30 = vadd.f32 %v1908_v31, %v1907_v18  ;;  %v1916_v63 = vadd.f32 %v1915_v53, %v1914_v52 }
 0x4da   : > { %v1910_v37 = vrot.slane %v1909_v30, 1  ;;  %v1917_v57 = vrot.slane %v1916_v63, 1 }
 0x4dc   : > { %v1911_v8 = vadd.f32 %v1910_v37, %v1909_v30  ;;  %v1918_v29 = vadd.f32 %v1917_v57, %v1916_v63 }
 0x4de   : > { %v1921_v19 = vadd.f32 %v1920_v54, %v1911_v8  ;;  %v1922_v20 = vadd.f32 %v1920_v54, %v1918_v29 }
 0x4e0   : > { %v1923_v15 = vsub.f32 0.0, %v1921_v19  ;;  %v1924_v34 = vsub.f32 0.0, %v1922_v20 }
 0x4e2   : > { %v1925_v58 = vmul.f32 1.442695, %v1923_v15  ;;  %v1927_v47 = vmul.f32 1.442695, %v1924_v34 }
 0x4e4   : > { %2284 = vpow2.f32 %v1925_v58 }
 0x4e5   : > { %2286 = vpow2.f32 %v1927_v47 }
 0x4ea   : > { %v2285_v22 = vpop.eup %2284 }
 0x4eb   : > { %v2287_v11 = vpop.eup %2286  ;;  %v1929_v50 = vadd.f32 1.0, %v2285_v22 }
 0x4ec   : > { %v1930_v2 = vadd.f32 1.0, %v2287_v11 }
 0x4ed   : > { %2288 = vrcp.f32 %v1929_v50  ;;  %v1942_v5 = vand.u32 2147483648, %v1929_v50  ;;  %v1940_v45 = vand.u32 2147483647, %v1929_v50  ;;  %vm1936_vm1 = vweird.f32 %v1929_v50 }
 0x4ee   : > { %2290 = vrcp.f32 %v1930_v2  ;;  %v1957_v14 = vand.u32 2147483648, %v1930_v2  ;;  %v1955_v13 = vand.u32 2147483647, %v1930_v2  ;;  %vm1951_vm3 = vweird.f32 %v1930_v2 }
 0x4ef   : > { %v1943_v12 = vor.u32 1.1754944e-38, %v1942_v5  ;;  %vm1941_vm15 = vcmp.eq.f32.partialorder %v1940_v45, 8.507059e+37 }
 0x4f0   : > { %v1958_v28 = vor.u32 1.1754944e-38, %v1957_v14  ;;  %vm1956_vm8 = vcmp.eq.f32.partialorder %v1955_v13, 8.507059e+37 }
 0x4f3   : > { %v2289_v33 = vpop.eup %2288 }
 0x4f4   : > { %v2291_v25 = vpop.eup %2290  ;;  %v1932_v6 = vmul.f32 %v2289_v33, %v1929_v50  ;;  %vm1937_vm2 = vweird.f32 %v2289_v33 }
 0x4f5   : > { %v1947_v60 = vmul.f32 %v2291_v25, %v1930_v2  ;;  %vm1952_vm10 = vweird.f32 %v2291_v25  ;;  %vm1938_vm7 = vmor %vm1936_vm1, %vm1937_vm2 }
 0x4f6   : > { %v1933_v7 = vsub.f32 1.0, %v1932_v6  ;;  %vm1953_vm4 = vmor %vm1951_vm3, %vm1952_vm10 }
 0x4f7   : > { %v1948_v21 = vsub.f32 1.0, %v1947_v60 }
 0x4f8   : > { %v1934_v40 = vmul.f32 %v2289_v33, %v1933_v7 }
 0x4f9   : > { %v1949_v46 = vmul.f32 %v2291_v25, %v1948_v21 }
 0x4fa   : > { %v1935_v23 = vadd.f32 %v2289_v33, %v1934_v40 }
 0x4fb   : > { %v1950_v51 = vadd.f32 %v2291_v25, %v1949_v46 }
 0x4fc   : > { %v1939_v16 = vsel %vm1938_vm7, %v2289_v33, %v1935_v23 }
 0x4fd   : > { %v1944_v56 = vsel %vm1941_vm15, %v1943_v12, %v1939_v16  ;;  %v1954_v3 = vsel %vm1953_vm4, %v2291_v25, %v1950_v51 }
 0x4fe   : > { %v1959_v61 = vsel %vm1956_vm8, %v1958_v28, %v1954_v3  ;;  %v1961_v41 = vmul.f32 %v1944_v56, %v3627_v59  ;;  %v1963_v17 = vmul.f32 %v1944_v56, %v3628_v4 }
 0x4ff   : > { %v1962_v36 = vmul.f32 %v1959_v61, %v3629_v0  ;;  %v1964_v38 = vmul.f32 %v1959_v61, %v3630_v26 }
 0x500   : > { %v1965_v62 = vadd.f32 %v2293_v43, %v1961_v41  ;;  %v1967_v48 = vadd.f32 %v2294_v9, %v1963_v17 }
 0x501   : > { %v1966_v39 = vadd.f32 %v2295_v27, %v1962_v36  ;;  %v1968_v44 = vadd.f32 %v2296_v1, %v1964_v38 }
 0x502   : > { %1969 = vst [vmem:[%s245_s18] sm:$0xff] %v1965_v62 }
 0x503   : > { %1970 = vst [vmem:[%s245_s18 + $0x8] sm:$0xff] %v1966_v39 }
 0x504   : > { %1971 = vst [vmem:[%s245_s18 + $0x10] sm:$0xff] %v1967_v48 }
 0x505   : > { %1972 = vst [vmem:[%s245_s18 + $0x18] sm:$0xff] %v1968_v44 }
 0x506   : > { %2354 = shalt.err (!%p2351_p4)
}
 0x507   : > { %s2494_s12 = smov 256   ;;  %s3632_s13 = smov 16  }
 0x508   : > { %2080 = dma.vmem_to_hbm [thread:$0]  (%p2578_p11), %s1987_s26, 512, %s1989_s9, %s1974_s8, %s2494_s12, %s2494_s12, %s3632_s13  }
 0x509 PF: > { %s2003_s11 = sand.u32 1, %s2381_s20   ;;  %p3633_p7 = scmp.ge.s32.totalorder %s2393_s23, 2 }
 0x50a   : > { %s2004_s17 = scalar_lea.sflag [#allocation5], %s2003_s11 }
 0x50b   : > { %p2087_p5 = pnand %p3633_p7, %p2582_p12 }
 0x50d   : > { %p2088_p8 = pneg %p2087_p5 }
 0x50f   : > { %2376 = dma.done.wait (%p2088_p8), %s2004_s17, 512  }
 0x510   : > { %2378 = vsyncadd (%p2088_p8), %s2004_s17, 4294966784  ;;  %p19_p10 = scmp.ge.s32.totalorder %s2553_s25, 4   ;;  %s3634_s20 = smov %s2385_s21 }
 0x511   : > { %s3635_s21 = smov %s2389_s22  ;;  %s3636_s22 = smov %s2565_s28 }
 0x512   : > { %s3637_s23 = smov %s2553_s25  ;;  %21 = sbr.rel (!%p19_p10) target bundleno = 7 (0x7), region = 85 }
 0x517   :  { %2010 = vsyncpa [#allocation4], 1 }
 0x518   :  { %2012 = vsyncpa [#allocation4 + $0x1], 1 }
 0x519   :  { %2013 = vsyncpa [#allocation5], 1 }
 0x51a   :  { %2015 = vsyncpa [#allocation5 + $0x1], 1 }

</bundles_post_ra>
